<compile_context>
chip_gen: v6e
topology: v6e:2x2x1
jax: 0.10.0
libtpu: 0.0.40
codegen_flags: <defaults>
</compile_context>

<pallas_src>
import jax
import jax.numpy as jnp
import numpy as np
from jax.experimental import pallas as pl
from jax.experimental.pallas import tpu as pltpu


def _round_up(x, m):
    return ((x + m - 1) // m) * m


def cnn_kernel(x_ref, wf_ref, bf_ref, mask_ref, fcw_ref, fcb_ref, out_ref):
    """One batch tile: fused conv (as per-tap matmuls) + ReLU + masked max-pool + FC + sigmoid."""
    M, _E = x_ref.shape                      # M = TB * S_al
    max_fs, _, C = wf_ref.shape              # C = 3 * n_filters (fused branches)
    l_out = mask_ref.shape[0]
    TB = out_ref.shape[0]
    S_al = M // TB

    x = x_ref[...]                           # (TB*S_al, E) bf16

    acc = jnp.zeros((TB, l_out, C), jnp.float32)
    for k in range(max_fs):                  # small static unrolled tap loop
        # One big MXU matmul per tap: (TB*S_al, E) x (E, 3F) -> f32
        y = jnp.dot(x, wf_ref[k], preferred_element_type=jnp.float32)
        # Tile-exact split of the flat row dim (S_al % 8 == 0), then shift-align tap k.
        acc = acc + y.reshape(TB, S_al, C)[:, k:k + l_out, :]

    # bias -> ReLU -> per-branch validity mask (zeros out positions t >= S - fs_i + 1,
    # including cross-tap garbage in the zero-padded tail), then max over time.
    acc = jnp.maximum(acc + bf_ref[...][None, :, :], 0.0) * mask_ref[...][None, :, :]
    pooled = jnp.max(acc, axis=1)            # (TB, 3F) f32

    # TODO(synk): nn.Dropout is identity in eval mode; training-mode mask not implemented.

    logits = jnp.dot(pooled, fcw_ref[...], preferred_element_type=jnp.float32) + fcb_ref[...]
    out_ref[...] = jax.nn.sigmoid(logits)    # (TB, O_pad), lane-dense store


def cnn_forward(x, hidden, params, filter_sizes):
    """x: (B, S) int32 token ids. Returns (sig_out (B, O), hidden)."""
    emb_table = params["embedding"]                       # (V, E)
    B, S = x.shape
    E = emb_table.shape[1]
    F = params["w0"].shape[2]
    nb = len(filter_sizes)
    C = nb * F
    O = params["fcw"].shape[1]
    min_fs, max_fs = min(filter_sizes), max(filter_sizes)

    # Tiling / padding choices.
    TB = min(256, _round_up(B, 8))                        # batch tile (multiple of 8)
    B_pad = _round_up(B, TB)
    S_al = _round_up(S + (max_fs - min_fs), 16)           # padded seq, bf16-tile friendly
    l_out = S_al - max_fs + 1                             # conv output positions computed
    OP = _round_up(O, 128)                                # lane-dense output width

    # Embedding gather (plain-JAX glue), cast to bf16, pad batch & seq, flatten to 2-D.
    embedded = emb_table[x.astype(jnp.int32)].astype(jnp.bfloat16)       # (B, S, E)
    embedded = jnp.pad(embedded, ((0, B_pad - B), (0, S_al - S), (0, 0)))
    embedded = embedded.reshape(B_pad * S_al, E)                          # (B_pad*S_al, E)

    # Fuse the three conv branches into one zero-padded weight / bias / validity mask.
    wf = jnp.zeros((max_fs, E, C), jnp.float32)
    bf = jnp.zeros((1, C), jnp.float32)
    mask_cols = []
    for i, fs in enumerate(filter_sizes):
        wf = wf.at[:fs, :, i * F:(i + 1) * F].set(params[f"w{i}"])
        bf = bf.at[:, i * F:(i + 1) * F].set(params[f"b{i}"])
        L_i = S - fs + 1
        col = (jnp.arange(l_out) < L_i).astype(jnp.float32)               # (l_out,)
        mask_cols.append(jnp.tile(col[:, None], (1, F)))
    mask = jnp.concatenate(mask_cols, axis=1)                             # (l_out, C)
    wf = wf.astype(jnp.bfloat16)

    # Pad fc to a lane-dense output width.
    fcw = jnp.zeros((C, OP), jnp.float32).at[:, :O].set(params["fcw"])
    fcb = jnp.zeros((1, OP), jnp.float32).at[:, :O].set(params["fcb"])

    out = pl.pallas_call(
        cnn_kernel,
        out_shape=jax.ShapeDtypeStruct((B_pad, OP), jnp.float32),
        grid_spec=pltpu.PrefetchScalarGridSpec(
            num_scalar_prefetch=0,
            grid=(B_pad // TB,),
            in_specs=[
                pl.BlockSpec((TB * S_al, E), lambda b: (b, 0)),      # embedded (flattened)
                pl.BlockSpec((max_fs, E, C), lambda b: (0, 0, 0)),   # fused conv weight
                pl.BlockSpec((1, C), lambda b: (0, 0)),              # fused conv bias
                pl.BlockSpec((l_out, C), lambda b: (0, 0)),          # time/branch mask
                pl.BlockSpec((C, OP), lambda b: (0, 0)),             # fc weight^T (padded)
                pl.BlockSpec((1, OP), lambda b: (0, 0)),             # fc bias (padded)
            ],
            out_specs=pl.BlockSpec((TB, OP), lambda b: (b, 0)),
        ),
        compiler_params=pltpu.CompilerParams(
            dimension_semantics=("parallel",),
        ),
    )(embedded, wf, bf, mask, fcw, fcb)

    return out[:B, :O], hidden


def cnn_forward_reference(x, params, filter_sizes):
    """Pure-JAX f32 reference mirroring the PyTorch forward (eval mode)."""
    emb = params["embedding"][x.astype(jnp.int32)].astype(jnp.float32)  # (B, S, E)
    pooled = []
    for i, fs in enumerate(filter_sizes):
        W = params[f"w{i}"]                      # (fs, E, F)
        b = params[f"b{i}"]                      # (1, F)
        S = emb.shape[1]
        L = S - fs + 1
        acc = jnp.zeros((emb.shape[0], L, W.shape[2]), jnp.float32)
        for k in range(fs):
            acc = acc + jnp.einsum("ble,ef->blf", emb[:, k:k + L, :], W[k])
        acc = jax.nn.relu(acc + b[None, :, :])
        pooled.append(jnp.max(acc, axis=1))      # (B, F)
    cat = jnp.concatenate(pooled, axis=1)        # (B, 3F)
    logits = cat @ params["fcw"] + params["fcb"]
    return jax.nn.sigmoid(logits)


def init_params(key, vocab_size, embedding_dim, n_filters, filter_sizes, output_dim):
    ks = jax.random.split(key, 10)
    params = {
        "embedding": jax.random.normal(ks[0], (vocab_size, embedding_dim), jnp.float32) * 0.1,
        "fcw": jax.random.normal(ks[1], (len(filter_sizes) * n_filters, output_dim),
                                 jnp.float32) * 0.1,
        "fcb": jax.random.normal(ks[2], (1, output_dim), jnp.float32) * 0.1,
    }
    for i, fs in enumerate(filter_sizes):
        params[f"w{i}"] = jax.random.normal(
            ks[3 + 2 * i], (fs, embedding_dim, n_filters), jnp.float32) * 0.1
        params[f"b{i}"] = jax.random.normal(
            ks[4 + 2 * i], (1, n_filters), jnp.float32) * 0.1
    return params


if __name__ == "__main__":
    # Small, forward-consistent shapes
    vocab_size = 50
    embedding_dim = 32
    n_filters = 8
    filter_sizes = (3, 4, 5)
    output_dim = 1
    batch = 2
    seq_len = 16

    key = jax.random.PRNGKey(0)
    pkey, xkey = jax.random.split(key)
    params = init_params(pkey, vocab_size, embedding_dim, n_filters, filter_sizes, output_dim)

    x = jax.random.randint(xkey, (batch, seq_len), 0, vocab_size, dtype=jnp.int32)
    hidden = None  # CNN.init_hidden returns None; forward passes it through untouched

    sig_out, hidden_out = cnn_forward(x, hidden, params, filter_sizes)
    sig_out = jax.block_until_ready(sig_out)

    ref = jax.block_until_ready(cnn_forward_reference(x, params, filter_sizes))
    # bf16 matmul operands vs f32 reference -> loosened tolerance.
    np.testing.assert_allclose(np.asarray(sig_out), np.asarray(ref), rtol=1e-2, atol=1e-2)

    assert sig_out.shape == (batch, output_dim)
    print("KERNEL_OK")
</pallas_src>

<mosaic_0001>
module attributes {stable_mosaic.version = 11 : i64} {
  func.func @cnn_kernel(%arg0: i32, %arg1: memref<256x32xbf16, #tpu.memory_space<vmem>>, %arg2: memref<5x32x24xbf16, #tpu.memory_space<vmem>>, %arg3: memref<1x24xf32, #tpu.memory_space<vmem>>, %arg4: memref<28x24xf32, #tpu.memory_space<vmem>>, %arg5: memref<24x128xf32, #tpu.memory_space<vmem>>, %arg6: memref<1x128xf32, #tpu.memory_space<vmem>>, %arg7: memref<8x128xf32, #tpu.memory_space<vmem>>) attributes {dimension_semantics = [#tpu.dimension_semantics<parallel>], iteration_bounds = array<i64: 1>, scalar_prefetch = 0 : i64, scratch_operands = 0 : i64, tpu.core_type = #tpu.core_type<tc>, window_params = [{transform_indices = @transform_0, window_bounds = array<i64: 256, 32>}, {pipeline_mode = #tpu.pipeline_mode<synchronous>, transform_indices = @transform_1, window_bounds = array<i64: 5, 32, 24>}, {pipeline_mode = #tpu.pipeline_mode<synchronous>, transform_indices = @transform_2, window_bounds = array<i64: 1, 24>}, {pipeline_mode = #tpu.pipeline_mode<synchronous>, transform_indices = @transform_3, window_bounds = array<i64: 28, 24>}, {pipeline_mode = #tpu.pipeline_mode<synchronous>, transform_indices = @transform_4, window_bounds = array<i64: 24, 128>}, {pipeline_mode = #tpu.pipeline_mode<synchronous>, transform_indices = @transform_5, window_bounds = array<i64: 1, 128>}, {transform_indices = @transform_6, window_bounds = array<i64: 8, 128>}]} {
    %c0 = arith.constant 0 : index
    %c0_0 = arith.constant 0 : index
    %0 = vector.load %arg1[%c0, %c0_0] : memref<256x32xbf16, #tpu.memory_space<vmem>>, vector<256x32xbf16>
    %cst = arith.constant 0.000000e+00 : f32
    %1 = vector.broadcast %cst : f32 to vector<8x28x24xf32>
    %c0_1 = arith.constant 0 : index
    %c0_2 = arith.constant 0 : index
    %c0_3 = arith.constant 0 : index
    %2 = vector.load %arg2[%c0_1, %c0_2, %c0_3] : memref<5x32x24xbf16, #tpu.memory_space<vmem>>, vector<1x32x24xbf16>
    %3 = vector.shape_cast %2 : vector<1x32x24xbf16> to vector<32x24xbf16>
    %cst_4 = arith.constant dense<0.000000e+00> : vector<256x24xf32>
    %4 = tpu.matmul %0, %3, %cst_4 {dimension_numbers = #tpu.dot_dimension_numbers<[1], [0], [0], [1], [0, 0, 1, 1], [], []>} : vector<256x32xbf16>, vector<32x24xbf16>, vector<256x24xf32> -> vector<256x24xf32>
    %5 = vector.shape_cast %4 : vector<256x24xf32> to vector<8x32x24xf32>
    %6 = vector.extract_strided_slice %5 {offsets = [0, 0, 0], sizes = [8, 28, 24], strides = [1, 1, 1]} : vector<8x32x24xf32> to vector<8x28x24xf32>
    %7 = arith.addf %1, %6 : vector<8x28x24xf32>
    %c1 = arith.constant 1 : index
    %c0_5 = arith.constant 0 : index
    %c0_6 = arith.constant 0 : index
    %8 = vector.load %arg2[%c1, %c0_5, %c0_6] : memref<5x32x24xbf16, #tpu.memory_space<vmem>>, vector<1x32x24xbf16>
    %9 = vector.shape_cast %8 : vector<1x32x24xbf16> to vector<32x24xbf16>
    %cst_7 = arith.constant dense<0.000000e+00> : vector<256x24xf32>
    %10 = tpu.matmul %0, %9, %cst_7 {dimension_numbers = #tpu.dot_dimension_numbers<[1], [0], [0], [1], [0, 0, 1, 1], [], []>} : vector<256x32xbf16>, vector<32x24xbf16>, vector<256x24xf32> -> vector<256x24xf32>
    %11 = vector.shape_cast %10 : vector<256x24xf32> to vector<8x32x24xf32>
    %12 = vector.extract_strided_slice %11 {offsets = [0, 1, 0], sizes = [8, 28, 24], strides = [1, 1, 1]} : vector<8x32x24xf32> to vector<8x28x24xf32>
    %13 = arith.addf %7, %12 : vector<8x28x24xf32>
    %c2 = arith.constant 2 : index
    %c0_8 = arith.constant 0 : index
    %c0_9 = arith.constant 0 : index
    %14 = vector.load %arg2[%c2, %c0_8, %c0_9] : memref<5x32x24xbf16, #tpu.memory_space<vmem>>, vector<1x32x24xbf16>
    %15 = vector.shape_cast %14 : vector<1x32x24xbf16> to vector<32x24xbf16>
    %cst_10 = arith.constant dense<0.000000e+00> : vector<256x24xf32>
    %16 = tpu.matmul %0, %15, %cst_10 {dimension_numbers = #tpu.dot_dimension_numbers<[1], [0], [0], [1], [0, 0, 1, 1], [], []>} : vector<256x32xbf16>, vector<32x24xbf16>, vector<256x24xf32> -> vector<256x24xf32>
    %17 = vector.shape_cast %16 : vector<256x24xf32> to vector<8x32x24xf32>
    %18 = vector.extract_strided_slice %17 {offsets = [0, 2, 0], sizes = [8, 28, 24], strides = [1, 1, 1]} : vector<8x32x24xf32> to vector<8x28x24xf32>
    %19 = arith.addf %13, %18 : vector<8x28x24xf32>
    %c3 = arith.constant 3 : index
    %c0_11 = arith.constant 0 : index
    %c0_12 = arith.constant 0 : index
    %20 = vector.load %arg2[%c3, %c0_11, %c0_12] : memref<5x32x24xbf16, #tpu.memory_space<vmem>>, vector<1x32x24xbf16>
    %21 = vector.shape_cast %20 : vector<1x32x24xbf16> to vector<32x24xbf16>
    %cst_13 = arith.constant dense<0.000000e+00> : vector<256x24xf32>
    %22 = tpu.matmul %0, %21, %cst_13 {dimension_numbers = #tpu.dot_dimension_numbers<[1], [0], [0], [1], [0, 0, 1, 1], [], []>} : vector<256x32xbf16>, vector<32x24xbf16>, vector<256x24xf32> -> vector<256x24xf32>
    %23 = vector.shape_cast %22 : vector<256x24xf32> to vector<8x32x24xf32>
    %24 = vector.extract_strided_slice %23 {offsets = [0, 3, 0], sizes = [8, 28, 24], strides = [1, 1, 1]} : vector<8x32x24xf32> to vector<8x28x24xf32>
    %25 = arith.addf %19, %24 : vector<8x28x24xf32>
    %c4 = arith.constant 4 : index
    %c0_14 = arith.constant 0 : index
    %c0_15 = arith.constant 0 : index
    %26 = vector.load %arg2[%c4, %c0_14, %c0_15] : memref<5x32x24xbf16, #tpu.memory_space<vmem>>, vector<1x32x24xbf16>
    %27 = vector.shape_cast %26 : vector<1x32x24xbf16> to vector<32x24xbf16>
    %cst_16 = arith.constant dense<0.000000e+00> : vector<256x24xf32>
    %28 = tpu.matmul %0, %27, %cst_16 {dimension_numbers = #tpu.dot_dimension_numbers<[1], [0], [0], [1], [0, 0, 1, 1], [], []>} : vector<256x32xbf16>, vector<32x24xbf16>, vector<256x24xf32> -> vector<256x24xf32>
    %29 = vector.shape_cast %28 : vector<256x24xf32> to vector<8x32x24xf32>
    %30 = vector.extract_strided_slice %29 {offsets = [0, 4, 0], sizes = [8, 28, 24], strides = [1, 1, 1]} : vector<8x32x24xf32> to vector<8x28x24xf32>
    %31 = arith.addf %25, %30 : vector<8x28x24xf32>
    %c0_17 = arith.constant 0 : index
    %c0_18 = arith.constant 0 : index
    %32 = vector.load %arg3[%c0_17, %c0_18] : memref<1x24xf32, #tpu.memory_space<vmem>>, vector<1x24xf32>
    %33 = vector.shape_cast %32 : vector<1x24xf32> to vector<1x1x24xf32>
    %34 = vector.broadcast %33 : vector<1x1x24xf32> to vector<8x28x24xf32>
    %35 = arith.addf %31, %34 : vector<8x28x24xf32>
    %cst_19 = arith.constant 0.000000e+00 : f32
    %36 = vector.broadcast %cst_19 : f32 to vector<8x28x24xf32>
    %37 = arith.maximumf %35, %36 : vector<8x28x24xf32>
    %c0_20 = arith.constant 0 : index
    %c0_21 = arith.constant 0 : index
    %38 = vector.load %arg4[%c0_20, %c0_21] : memref<28x24xf32, #tpu.memory_space<vmem>>, vector<28x24xf32>
    %39 = vector.shape_cast %38 : vector<28x24xf32> to vector<1x28x24xf32>
    %40 = vector.broadcast %39 : vector<1x28x24xf32> to vector<8x28x24xf32>
    %41 = arith.mulf %37, %40 : vector<8x28x24xf32>
    %cst_22 = arith.constant dense<0xFF800000> : vector<8x24xf32>
    %42 = vector.multi_reduction <maximumf>, %41, %cst_22 [1] : vector<8x28x24xf32> to vector<8x24xf32>
    %c0_23 = arith.constant 0 : index
    %c0_24 = arith.constant 0 : index
    %43 = vector.load %arg5[%c0_23, %c0_24] : memref<24x128xf32, #tpu.memory_space<vmem>>, vector<24x128xf32>
    %cst_25 = arith.constant dense<0.000000e+00> : vector<8x128xf32>
    %44 = tpu.matmul %42, %43, %cst_25 {dimension_numbers = #tpu.dot_dimension_numbers<[1], [0], [0], [1], [0, 0, 1, 1], [], []>} : vector<8x24xf32>, vector<24x128xf32>, vector<8x128xf32> -> vector<8x128xf32>
    %c0_26 = arith.constant 0 : index
    %c0_27 = arith.constant 0 : index
    %45 = vector.load %arg6[%c0_26, %c0_27] : memref<1x128xf32, #tpu.memory_space<vmem>>, vector<1x128xf32>
    %46 = vector.broadcast %45 : vector<1x128xf32> to vector<8x128xf32>
    %47 = arith.addf %44, %46 : vector<8x128xf32>
    %48 = arith.negf %47 : vector<8x128xf32>
    %49 = math.exp %48 : vector<8x128xf32>
    %cst_28 = arith.constant 1.000000e+00 : f32
    %50 = vector.broadcast %cst_28 : f32 to vector<8x128xf32>
    %51 = arith.addf %50, %49 : vector<8x128xf32>
    %52 = arith.divf %50, %51 : vector<8x128xf32>
    %c0_29 = arith.constant 0 : index
    %c0_30 = arith.constant 0 : index
    %53 = vector.load %arg7[%c0_29, %c0_30] : memref<8x128xf32, #tpu.memory_space<vmem>>, vector<8x128xf32>
    tpu.vector_store %arg7[%c0_29, %c0_30], %52 {strides = array<i32>} : memref<8x128xf32, #tpu.memory_space<vmem>>, vector<8x128xf32>,
    return
  }
  func.func @transform_0(%arg0: i32) -> (i32, i32) {
    %c0_i32 = arith.constant 0 : i32
    %c0_i32_0 = arith.constant 0 : i32
    return %arg0, %c0_i32 : i32, i32
  }
  func.func @transform_1(%arg0: i32) -> (i32, i32, i32) {
    %c0_i32 = arith.constant 0 : i32
    %c0_i32_0 = arith.constant 0 : i32
    %c0_i32_1 = arith.constant 0 : i32
    %c0_i32_2 = arith.constant 0 : i32
    return %c0_i32, %c0_i32_0, %c0_i32_1 : i32, i32, i32
  }
  func.func @transform_2(%arg0: i32) -> (i32, i32) {
    %c0_i32 = arith.constant 0 : i32
    %c0_i32_0 = arith.constant 0 : i32
    %c0_i32_1 = arith.constant 0 : i32
    return %c0_i32, %c0_i32_0 : i32, i32
  }
  func.func @transform_3(%arg0: i32) -> (i32, i32) {
    %c0_i32 = arith.constant 0 : i32
    %c0_i32_0 = arith.constant 0 : i32
    %c0_i32_1 = arith.constant 0 : i32
    return %c0_i32, %c0_i32_0 : i32, i32
  }
  func.func @transform_4(%arg0: i32) -> (i32, i32) {
    %c0_i32 = arith.constant 0 : i32
    %c0_i32_0 = arith.constant 0 : i32
    %c0_i32_1 = arith.constant 0 : i32
    return %c0_i32, %c0_i32_0 : i32, i32
  }
  func.func @transform_5(%arg0: i32) -> (i32, i32) {
    %c0_i32 = arith.constant 0 : i32
    %c0_i32_0 = arith.constant 0 : i32
    %c0_i32_1 = arith.constant 0 : i32
    return %c0_i32, %c0_i32_0 : i32, i32
  }
  func.func @transform_6(%arg0: i32) -> (i32, i32) {
    %c0_i32 = arith.constant 0 : i32
    %c0_i32_0 = arith.constant 0 : i32
    return %arg0, %c0_i32 : i32, i32
  }
}

</mosaic_0001>

<bundles_post_ra>
// kernel: tpu_custom_call.1
= control target key start
LH: loop header
LB: loop body
LE: loop exit
PB: predicated region body
PF: predicated region fallthrough
CT: control target
= control target key end

     0   :  { %vm153_vm0 = vcmask 261120   ;;  %s3440_s0 = inlined_call_operand.vmem [shape: bf16[256,32], index: 0, kind: input, shape index: {}]   ;;  %s3441_s1 = inlined_call_operand.vmem [shape: bf16[5,32,24], index: 1, kind: input, shape index: {}]   ;;  %s3442_s2 = inlined_call_operand.vmem [shape: f32[1,24], index: 2, kind: input, shape index: {}]   ;;  %s3443_s3 = inlined_call_operand.vmem [shape: f32[28,24], index: 3, kind: input, shape index: {}]   ;;  %s3444_s4 = inlined_call_operand.vmem [shape: f32[24,128], index: 4, kind: input, shape index: {}]   ;;  %s3445_s5 = inlined_call_operand.vmem [shape: f32[1,128], index: 5, kind: input, shape index: {}]   ;;  %s3446_s6 = inlined_call_operand.hbm [shape: f32[8,128], index: 6, kind: output, shape index: {}]  }
   0x1   :  { %v2473_v0 = vld [vmem:[%s3441_s1 + $0x8] sm:$0xff]   ;;  %v2474_v1 = vld [vmem:[%s3441_s1] sm:$0xff]   ;;  %v2577_v3 = vld [vmem:[%s3440_s0 + $0x50] sm:$0xff]  }
   0x2   :  { %2277 = vmatprep.subr.bf16.mxu0 %v2473_v0  ;;  %2466 = vmatprep.subr.bf16.mxu1 %v2473_v0  ;;  %v2572_v2 = vld [vmem:[%s3440_s0] sm:$0xff]   ;;  %v2582_v4 = vld [vmem:[%s3440_s0 + $0x8] sm:$0xff]   ;;  %v2591_v5 = vld [vmem:[%s3440_s0 + $0x58] sm:$0xff]  }
   0x3   :  { %2278 = vmatpush3.bf16.msra.mxu0 %v2473_v0  ;;  %2468 = vmatpush3.bf16.msra.mxu1 %v2473_v0  ;;  %v2479_v6 = vld [vmem:[%s3441_s1 + $0x28] sm:$0xff]   ;;  %v2599_v7 = vld [vmem:[%s3440_s0 + $0x10] sm:$0xff]   ;;  %v2604_v8 = vld [vmem:[%s3440_s0 + $0x60] sm:$0xff]  }
   0x4   :  { %2279 = vmatprep.subr.bf16.mxu0 %v2474_v1  ;;  %2467 = vmatprep.subr.bf16.mxu1 %v2474_v1  ;;  %v2484_v9 = vld [vmem:[%s3441_s1 + $0x18] sm:$0xff]   ;;  %v2625_v11 = vld [vmem:[%s3440_s0 + $0x68] sm:$0xff]   ;;  %v2630_v12 = vld [vmem:[%s3440_s0 + $0x20] sm:$0xff]  }
   0x5   :  { %2281 = vmatprep.mubr.msk.bf16.mxu0 %vm153_vm0, %v2572_v2  ;;  %2301 = vmatprep.mubr.msk.bf16.mxu1 %vm153_vm0, %v2577_v3  ;;  %v2620_v10 = vld [vmem:[%s3440_s0 + $0x18] sm:$0xff]   ;;  %v2635_v13 = vld [vmem:[%s3440_s0 + $0x70] sm:$0xff]   ;;  %v2490_v15 = vld [vmem:[%s3441_s1 + $0x20] sm:$0xff]  }
   0x6   :  { %v2489_v14 = vld [vmem:[%s3441_s1 + $0x10] sm:$0xff]   ;;  %v2654_v16 = vld [vmem:[%s3440_s0 + $0x28] sm:$0xff]   ;;  %v2659_v17 = vld [vmem:[%s3440_s0 + $0x78] sm:$0xff]  }
   0x7   :  { %2280 = vmatpush3.bf16.msra.mxu0 %v2474_v1  ;;  %2469 = vmatpush3.bf16.msra.mxu1 %v2474_v1  ;;  %v2664_v18 = vld [vmem:[%s3440_s0 + $0x30] sm:$0xff]   ;;  %v2495_v19 = vld [vmem:[%s3441_s1 + $0x38] sm:$0xff]   ;;  %v2496_v20 = vld [vmem:[%s3441_s1 + $0x48] sm:$0xff]  }
   0x8   :  { %2349 = vmatprep.subr.bf16.mxu0 %v2479_v6  ;;  %2313 = vmatprep.subr.bf16.mxu1 %v2484_v9 }
   0xa   :  { %2282 = vmatmul.mubr.msk.bf16.vlgmr.msra.gmra.mxu0 %vm153_vm0, %v2582_v4  ;;  %2302 = vmatmul.mubr.msk.bf16.vlgmr.msra.gmra.mxu1 %vm153_vm0, %v2591_v5 }
   0xb   :  { %2350 = vmatpush3.bf16.msra.mxu0 %v2479_v6  ;;  %2285 = vmatprep.mubr.msk.bf16.mxu0 %vm153_vm0, %v2599_v7 }
   0xc   :  { %2305 = vmatprep.mubr.msk.bf16.mxu1 %vm153_vm0, %v2604_v8  ;;  %2314 = vmatpush3.bf16.msra.mxu1 %v2484_v9 }
   0xd   :  { %2315 = vmatprep.subr.bf16.mxu1 %v2489_v14  ;;  %2351 = vmatprep.subr.bf16.mxu0 %v2490_v15 }
   0xf   :  { %2352 = vmatpush3.bf16.msra.mxu0 %v2490_v15 }
  0x10   :  { %2316 = vmatpush3.bf16.msra.mxu1 %v2489_v14  ;;  %2421 = vmatprep.subr.bf16.mxu0 %v2496_v20 }
  0x11   :  { %2385 = vmatprep.subr.bf16.mxu1 %v2495_v19 }
  0x12   :  { %2286 = vmatmul.mubr.msk.bf16.gmra.mxu0 %vm153_vm0, %v2620_v10  ;;  %2306 = vmatmul.mubr.msk.bf16.gmra.mxu1 %vm153_vm0, %v2625_v11 }
  0x13   :  { %2289 = vmatprep.mubr.msk.bf16.mxu0 %vm153_vm0, %v2630_v12  ;;  %2309 = vmatprep.mubr.msk.bf16.mxu1 %vm153_vm0, %v2635_v13 }
  0x1a   :  { %2290 = vmatmul.mubr.msk.bf16.gmra.mxu0 %vm153_vm0, %v2654_v16  ;;  %2310 = vmatmul.mubr.msk.bf16.gmra.mxu1 %vm153_vm0, %v2659_v17 }
  0x1b   :  { %11 = vsyncpa [#allocation3], 0  ;;  %2293 = vmatprep.mubr.msk.bf16.mxu0 %vm153_vm0, %v2664_v18  ;;  %2317 = vmatprep.mubr.msk.bf16.mxu1 %vm153_vm0, %v2572_v2  ;;  %v2683_v21 = vld [vmem:[%s3440_s0 + $0x38] sm:$0xff]   ;;  %v2688_v22 = vld [vmem:[%s3440_s0 + $0x40] sm:$0xff]   ;;  %vm605_vm1 = vcmask 1046528   ;;  %vm936_vm2 = vcmask 1045504  }
  0x1c   :  { %v2497_v23 = vld [vmem:[%s3441_s1 + $0x30] sm:$0xff]   ;;  %v2494_v24 = vld [vmem:[%s3440_s0 + $0x48] sm:$0xff]   ;;  %v2498_v25 = vld [vmem:[%s3441_s1 + $0x40] sm:$0xff]   ;;  %vm2526_vm3 = vmmov 0   ;;  %vm1267_vm4 = vcmask 1044480   ;;  %vm1598_vm5 = vcmask 1043456  }
  0x1d   :  { %vm1832_vm6 = vcmask 191488   ;;  %vm1826_vm7 = vcmask 195584   ;;  %vm1950_vm8 = vcmask 1041409   ;;  %vm1952_vm9 = vcmask 1042434   ;;  %s2527_s14 = smov [#allocation2]  }
  0x1e   :  { %vm1954_vm10 = vcmask 1043459   ;;  %vm1956_vm11 = vcmask 1044484   ;;  %vm1958_vm12 = vcmask 1045509   ;;  %vm1960_vm13 = vcmask 1046534   ;;  %s2049_s15 = sshll.u32 %s2527_s14, 4  ;;  %s2050_s15 = int_to_ptr.vmem [resolvable:$true] %s2049_s15 }
  0x1f   :  { %vm1962_vm14 = vcmask 1047559   ;;  %s2503_s16 = scalar_lea.vmem %s2050_s15, 128  ;;  %p2508_p1 = scmp.lt.s32.totalorder %s2050_s15, %s2050_s15 }
  0x20   :  { %p2504_p0 = scmp.ne.s32.totalorder %s2050_s15, %s2503_s16  ;;  %p2509_p2 = scmp.lt.s32.totalorder %s2503_s16, %s2503_s16 }
  0x22   :  { %2294 = vmatmul.mubr.msk.bf16.gmra.mxu0 %vm153_vm0, %v2683_v21  ;;  %2318 = vmatmul.mubr.msk.bf16.vlgmr.msra.gmra.mxu1 %vm153_vm0, %v2582_v4  ;;  %p2510_p3 = por %p2509_p2, %p2508_p1 }
  0x23   :  { %2297 = vmatprep.mubr.msk.bf16.mxu0 %vm153_vm0, %v2688_v22  ;;  %2321 = vmatprep.mubr.msk.bf16.mxu1 %vm153_vm0, %v2599_v7 }
  0x24   :  { %2386 = vmatpush3.bf16.msra.mxu1 %v2495_v19  ;;  %p2511_p4 = pnand %p2510_p3, %p2504_p0 }
  0x25   :  { %2387 = vmatprep.subr.bf16.mxu1 %v2497_v23 }
  0x28   :  { %2388 = vmatpush3.bf16.msra.mxu1 %v2497_v23 }
  0x2a   :  { %2298 = vmatmul.mubr.msk.bf16.gmra.mxu0 %vm153_vm0, %v2494_v24  ;;  %2322 = vmatmul.mubr.msk.bf16.gmra.mxu1 %vm153_vm0, %v2620_v10 }
  0x2b   :  { %2325 = vmatprep.mubr.msk.bf16.mxu1 %vm153_vm0, %v2630_v12  ;;  %2353 = vmatprep.mubr.msk.bf16.mxu0 %vm153_vm0, %v2572_v2 }
  0x32   :  { %2326 = vmatmul.mubr.msk.bf16.gmra.mxu1 %vm153_vm0, %v2654_v16  ;;  %2354 = vmatmul.mubr.msk.bf16.vlgmr.msra.gmra.mxu0 %vm153_vm0, %v2582_v4 }
  0x33   :  { %2422 = vmatpush3.bf16.msra.mxu0 %v2496_v20  ;;  %2329 = vmatprep.mubr.msk.bf16.mxu1 %vm153_vm0, %v2664_v18 }
  0x34   :  { %2357 = vmatprep.mubr.msk.bf16.mxu0 %vm153_vm0, %v2599_v7  ;;  %2423 = vmatprep.subr.bf16.mxu0 %v2498_v25 }
  0x37   :  { %2424 = vmatpush3.bf16.msra.mxu0 %v2498_v25 }
  0x3a   :  { %2330 = vmatmul.mubr.msk.bf16.gmra.mxu1 %vm153_vm0, %v2683_v21  ;;  %2358 = vmatmul.mubr.msk.bf16.gmra.mxu0 %vm153_vm0, %v2620_v10 }
  0x3b   :  { %2333 = vmatprep.mubr.msk.bf16.mxu1 %vm153_vm0, %v2688_v22  ;;  %2361 = vmatprep.mubr.msk.bf16.mxu0 %vm153_vm0, %v2630_v12 }
  0x42   :  { %2334 = vmatmul.mubr.msk.bf16.gmra.mxu1 %vm153_vm0, %v2494_v24  ;;  %2362 = vmatmul.mubr.msk.bf16.gmra.mxu0 %vm153_vm0, %v2654_v16 }
  0x43   :  { %2337 = vmatprep.mubr.msk.bf16.mxu1 %vm153_vm0, %v2577_v3  ;;  %2365 = vmatprep.mubr.msk.bf16.mxu0 %vm153_vm0, %v2664_v18 }
  0x4a   :  { %2338 = vmatmul.mubr.msk.bf16.gmra.mxu1 %vm153_vm0, %v2591_v5  ;;  %2366 = vmatmul.mubr.msk.bf16.gmra.mxu0 %vm153_vm0, %v2683_v21 }
  0x4b   :  { %2341 = vmatprep.mubr.msk.bf16.mxu1 %vm153_vm0, %v2604_v8  ;;  %2369 = vmatprep.mubr.msk.bf16.mxu0 %vm153_vm0, %v2688_v22 }
  0x52   :  { %2342 = vmatmul.mubr.msk.bf16.gmra.mxu1 %vm153_vm0, %v2625_v11  ;;  %2370 = vmatmul.mubr.msk.bf16.gmra.mxu0 %vm153_vm0, %v2494_v24 }
  0x53   :  { %2345 = vmatprep.mubr.msk.bf16.mxu1 %vm153_vm0, %v2635_v13  ;;  %2373 = vmatprep.mubr.msk.bf16.mxu0 %vm153_vm0, %v2577_v3 }
  0x5a   :  { %2346 = vmatmul.mubr.msk.bf16.gmra.mxu1 %vm153_vm0, %v2659_v17  ;;  %2374 = vmatmul.mubr.msk.bf16.gmra.mxu0 %vm153_vm0, %v2591_v5 }
  0x5b   :  { %2377 = vmatprep.mubr.msk.bf16.mxu0 %vm153_vm0, %v2604_v8  ;;  %2389 = vmatprep.mubr.msk.bf16.mxu1 %vm153_vm0, %v2572_v2 }
  0x62   :  { %2378 = vmatmul.mubr.msk.bf16.gmra.mxu0 %vm153_vm0, %v2625_v11  ;;  %2390 = vmatmul.mubr.msk.bf16.vlgmr.msra.gmra.mxu1 %vm153_vm0, %v2582_v4 }
  0x63   :  { %2381 = vmatprep.mubr.msk.bf16.mxu0 %vm153_vm0, %v2635_v13  ;;  %2393 = vmatprep.mubr.msk.bf16.mxu1 %vm153_vm0, %v2599_v7 }
  0x6a   :  { %2382 = vmatmul.mubr.msk.bf16.gmra.mxu0 %vm153_vm0, %v2659_v17  ;;  %2394 = vmatmul.mubr.msk.bf16.gmra.mxu1 %vm153_vm0, %v2620_v10 }
  0x6b   :  { %2397 = vmatprep.mubr.msk.bf16.mxu1 %vm153_vm0, %v2630_v12  ;;  %2425 = vmatprep.mubr.msk.bf16.mxu0 %vm153_vm0, %v2572_v2 }
  0x72   :  { %2398 = vmatmul.mubr.msk.bf16.gmra.mxu1 %vm153_vm0, %v2654_v16  ;;  %2426 = vmatmul.mubr.msk.bf16.vlgmr.msra.gmra.mxu0 %vm153_vm0, %v2582_v4 }
  0x73   :  { %2401 = vmatprep.mubr.msk.bf16.mxu1 %vm153_vm0, %v2664_v18  ;;  %2429 = vmatprep.mubr.msk.bf16.mxu0 %vm153_vm0, %v2599_v7 }
  0x7a   :  { %2402 = vmatmul.mubr.msk.bf16.gmra.mxu1 %vm153_vm0, %v2683_v21  ;;  %2430 = vmatmul.mubr.msk.bf16.gmra.mxu0 %vm153_vm0, %v2620_v10 }
  0x7b   :  { %2405 = vmatprep.mubr.msk.bf16.mxu1 %vm153_vm0, %v2688_v22  ;;  %2433 = vmatprep.mubr.msk.bf16.mxu0 %vm153_vm0, %v2630_v12 }
  0x82   :  { %2406 = vmatmul.mubr.msk.bf16.gmra.mxu1 %vm153_vm0, %v2494_v24  ;;  %2434 = vmatmul.mubr.msk.bf16.gmra.mxu0 %vm153_vm0, %v2654_v16 }
  0x83   :  { %2409 = vmatprep.mubr.msk.bf16.mxu1 %vm153_vm0, %v2577_v3  ;;  %2437 = vmatprep.mubr.msk.bf16.mxu0 %vm153_vm0, %v2664_v18 }
  0x8a   :  { %2410 = vmatmul.mubr.msk.bf16.gmra.mxu1 %vm153_vm0, %v2591_v5  ;;  %2438 = vmatmul.mubr.msk.bf16.gmra.mxu0 %vm153_vm0, %v2683_v21 }
  0x8b   :  { %2413 = vmatprep.mubr.msk.bf16.mxu1 %vm153_vm0, %v2604_v8  ;;  %2441 = vmatprep.mubr.msk.bf16.mxu0 %vm153_vm0, %v2688_v22 }
  0x92   :  { %2414 = vmatmul.mubr.msk.bf16.gmra.mxu1 %vm153_vm0, %v2625_v11  ;;  %2442 = vmatmul.mubr.msk.bf16.gmra.mxu0 %vm153_vm0, %v2494_v24 }
  0x93   :  { %2417 = vmatprep.mubr.msk.bf16.mxu1 %vm153_vm0, %v2635_v13  ;;  %2445 = vmatprep.mubr.msk.bf16.mxu0 %vm153_vm0, %v2577_v3 }
  0x9a   :  { %2418 = vmatmul.mubr.msk.bf16.gmra.mxu1 %vm153_vm0, %v2659_v17  ;;  %2446 = vmatmul.mubr.msk.bf16.gmra.mxu0 %vm153_vm0, %v2591_v5 }
  0x9b   :  { %2449 = vmatprep.mubr.msk.bf16.mxu0 %vm153_vm0, %v2604_v8 }
  0xa2   :  { %2450 = vmatmul.mubr.msk.bf16.gmra.mxu0 %vm153_vm0, %v2625_v11 }
  0xa3   :  { %2453 = vmatprep.mubr.msk.bf16.mxu0 %vm153_vm0, %v2635_v13 }
  0xaa   :  { %2454 = vmatmul.mubr.msk.bf16.gmra.mxu0 %vm153_vm0, %v2659_v17 }
  0xca   :  { %v2283_v26 = vpop.f32.mrf.mxu0  ;;  %v2826_v27 = vpop.f32.mrf.mxu1 }
  0xcc   :  { %v236_v28 = vpop.f32.mrf.mxu0  ;;  %v2828_v29 = vpop.f32.mrf.mxu1 }
  0xce   :  { %v2284_v30 = vpop.f32.mrf.mxu0  ;;  %v2830_v31 = vpop.f32.mrf.mxu1 }
  0xd0   :  { %v239_v32 = vpop.f32.mrf.mxu0  ;;  %v2832_v33 = vpop.f32.mrf.mxu1 }
  0xd2   :  { %v2287_v34 = vpop.f32.mrf.mxu0  ;;  %v2834_v35 = vpop.f32.mrf.mxu1 }
  0xd4   :  { %v252_v36 = vpop.f32.mrf.mxu0  ;;  %v2836_v37 = vpop.f32.mrf.mxu1 }
  0xd6   :  { %v2288_v38 = vpop.f32.mrf.mxu0  ;;  %v2838_v39 = vpop.f32.mrf.mxu1 }
  0xd8   :  { %v255_v40 = vpop.f32.mrf.mxu0  ;;  %v2840_v41 = vpop.f32.mrf.mxu1 }
  0xda   :  { %v2842_v42 = vpop.f32.mrf.mxu0  ;;  %v2844_v43 = vpop.f32.mrf.mxu1 }
  0xdc   :  { %v2846_v44 = vpop.f32.mrf.mxu0  ;;  %v2848_v45 = vpop.f32.mrf.mxu1 }
  0xde   :  { %v2292_v46 = vpop.f32.mrf.mxu0  ;;  %v2850_v47 = vpop.f32.mrf.mxu1 }
  0xe0   :  { %v2852_v48 = vpop.f32.mrf.mxu0  ;;  %v2854_v49 = vpop.f32.mrf.mxu1 }
  0xe2   :  { %v2856_v50 = vpop.f32.mrf.mxu0  ;;  %v2319_v51 = vpop.f32.mrf.mxu1 }
  0xe3   :  { %v609_v54 = vrot.slane %v2319_v51, 1 }
  0xe4   :  { %v2858_v52 = vpop.f32.mrf.mxu0  ;;  %v446_v53 = vpop.f32.mrf.mxu1 }
  0xe5   :  { %v606_v57 = vrot.slane %v446_v53, 1 }
  0xe6   :  { %v2860_v55 = vpop.f32.mrf.mxu0  ;;  %v2320_v56 = vpop.f32.mrf.mxu1 }
  0xe7   :  { %v611_v58 = vrot.slane %v2320_v56, 1 }
  0xe8   :  { %v2862_v59 = vpop.f32.mrf.mxu0  ;;  %v449_v60 = vpop.f32.mrf.mxu1 }
  0xe9   :  { %v612_v61 = vsel %vm605_vm1, %v609_v54, %v611_v58  ;;  %v697_v62 = vadd.f32 %v2284_v30, %v611_v58  ;;  %v607_v63 = vrot.slane %v449_v60, 1 }
  0xea   :  { %v696_v0 = vadd.f32 %v2283_v26, %v612_v61  ;;  %v2865_v1 = vpop.f32.mrf.mxu0  ;;  %v2323_v2 = vpop.f32.mrf.mxu1 }
  0xeb   :  { %v608_v3 = vsel %vm605_vm1, %v606_v57, %v607_v63  ;;  %v610_v4 = vsel %vm605_vm1, %v607_v63, %v609_v54  ;;  %v616_v9 = vrot.slane %v2323_v2, 1  ;;  %v2525_v2 = vmov 0.0  }
  0xec   :  { %v694_v5 = vadd.f32 %v608_v3, %v236_v28  ;;  %v695_v6 = vadd.f32 %v610_v4, %v239_v32  ;;  %v2869_v7 = vpop.f32.mrf.mxu0  ;;  %v462_v8 = vpop.f32.mrf.mxu1  ;;  %2457 = vmatprep.subr.mxu1 %v2525_v2  ;;  %2463 = vmatprep.mubr.msk.f32.mxu1 %vm2526_vm3, %v2525_v2 }
  0xed   :  { %v613_v12 = vrot.slane %v462_v8, 1 }
  0xee   :  { %v2871_v10 = vpop.f32.mrf.mxu0  ;;  %v2324_v11 = vpop.f32.mrf.mxu1 }
  0xef   :  { %v618_v13 = vrot.slane %v2324_v11, 1 }
  0xf0   :  { %v2873_v14 = vpop.f32.mrf.mxu0  ;;  %v465_v15 = vpop.f32.mrf.mxu1 }
  0xf1   :  { %v619_v16 = vsel %vm605_vm1, %v616_v9, %v618_v13  ;;  %v701_v17 = vadd.f32 %v2288_v38, %v618_v13  ;;  %v614_v18 = vrot.slane %v465_v15, 1 }
  0xf2   :  { %v700_v19 = vadd.f32 %v2287_v34, %v619_v16  ;;  %v2327_v20 = vpop.f32.mrf.mxu1  ;;  %v2355_v21 = vpop.f32.mrf.mxu0 }
  0xf3   :  { %v615_v22 = vsel %vm605_vm1, %v613_v12, %v614_v18  ;;  %v617_v23 = vsel %vm605_vm1, %v614_v18, %v616_v9  ;;  %v623_v30 = vrot.slane %v2327_v20, 1  ;;  %v940_v53 = vrot.slane %v2355_v21, 2 }
  0xf4   :  { %v2878_v24 = vadd.f32 %v615_v22, %v252_v36  ;;  %v2880_v25 = vadd.f32 %v617_v23, %v255_v40  ;;  %v478_v26 = vpop.f32.mrf.mxu1  ;;  %v777_v28 = vpop.f32.mrf.mxu0  ;;  %v1934_v36 = vld [vmem:[%s3444_s4 + $0x10] sm:$0xff] }
  0xf5   :  { %v620_v34 = vrot.slane %v478_v26, 1  ;;  %v937_v56 = vrot.slane %v777_v28, 2  ;;  %2458 = vmatpush3.msra.mxu1 %v1934_v36 }
  0xf6   :  { %v2328_v32 = vpop.f32.mrf.mxu1  ;;  %v2356_v51 = vpop.f32.mrf.mxu0  ;;  %2459 = vmatprep.subr.mxu1 %v2525_v2 }
  0xf7   :  { %v625_v38 = vrot.slane %v2328_v32, 1  ;;  %v942_v54 = vrot.slane %v2356_v51, 2 }
  0xf8   :  { %v481_v57 = vpop.f32.mrf.mxu1  ;;  %v780_v58 = vpop.f32.mrf.mxu0 }
  0xf9   :  { %v626_v40 = vsel %vm605_vm1, %v623_v30, %v625_v38  ;;  %v2886_v60 = vadd.f32 %v2292_v46, %v625_v38  ;;  %v943_v61 = vsel %vm936_vm2, %v940_v53, %v942_v54  ;;  %v2889_v63 = vadd.f32 %v942_v54, %v697_v62 }
  0xfa   :  { %v2893_v3 = vadd.f32 %v2842_v42, %v626_v40  ;;  %v2895_v4 = vadd.f32 %v943_v61, %v696_v0  ;;  %v621_v8 = vrot.slane %v481_v57, 1  ;;  %v938_v9 = vrot.slane %v780_v58, 2  ;;  %v2331_v11 = vpop.f32.mrf.mxu1  ;;  %v2359_v12 = vpop.f32.mrf.mxu0 }
  0xfb   :  { %v630_v13 = vrot.slane %v2331_v11, 1  ;;  %v947_v28 = vrot.slane %v2359_v12, 2 }
  0xfc   :  { %v622_v46 = vsel %vm605_vm1, %v620_v34, %v621_v8  ;;  %v624_v62 = vsel %vm605_vm1, %v621_v8, %v623_v30  ;;  %v939_v15 = vsel %vm936_vm2, %v937_v56, %v938_v9  ;;  %v941_v16 = vsel %vm936_vm2, %v938_v9, %v940_v53  ;;  %v494_v42 = vpop.f32.mrf.mxu1  ;;  %v793_v18 = vpop.f32.mrf.mxu0 }
  0xfd   :  { %v2903_v0 = vadd.f32 %v622_v46, %v2846_v44  ;;  %v2906_v20 = vadd.f32 %v624_v62, %v2852_v48  ;;  %v2908_v21 = vadd.f32 %v939_v15, %v694_v5  ;;  %v2910_v22 = vadd.f32 %v941_v16, %v695_v6 }
  0xfe   :  { %v2332_v23 = vpop.f32.mrf.mxu1  ;;  %v2360_v26 = vpop.f32.mrf.mxu0  ;;  %v627_v51 = vrot.slane %v494_v42, 1  ;;  %v944_v38 = vrot.slane %v793_v18, 2 }
  0xff   :  { %v632_v30 = vrot.slane %v2332_v23, 1  ;;  %v949_v32 = vrot.slane %v2360_v26, 2  ;;  %v1933_v23 = vld [vmem:[%s3444_s4 + $0x8] sm:$0xff] }
 0x100   :  { %v497_v53 = vpop.f32.mrf.mxu1  ;;  %v796_v54 = vpop.f32.mrf.mxu0  ;;  %2460 = vmatpush3.msra.mxu1 %v1933_v23 }
 0x101   :  { %v633_v34 = vsel %vm605_vm1, %v630_v13, %v632_v30  ;;  %v2914_v44 = vadd.f32 %v2860_v55, %v632_v30  ;;  %v950_v48 = vsel %vm936_vm2, %v947_v28, %v949_v32  ;;  %v2917_v5 = vadd.f32 %v949_v32, %v701_v17  ;;  %2461 = vmatprep.subr.mxu1 %v2525_v2 }
 0x102   :  { %v708_v6 = vadd.f32 %v2856_v50, %v633_v34  ;;  %v2920_v56 = vadd.f32 %v950_v48, %v700_v19  ;;  %v628_v57 = vrot.slane %v497_v53, 1  ;;  %v945_v58 = vrot.slane %v796_v54, 2  ;;  %v2335_v36 = vpop.f32.mrf.mxu1  ;;  %v2363_v40 = vpop.f32.mrf.mxu0 }
 0x103   :  { %v637_v61 = vrot.slane %v2335_v36, 1  ;;  %v954_v42 = vrot.slane %v2363_v40, 2 }
 0x104   :  { %v629_v8 = vsel %vm605_vm1, %v627_v51, %v628_v57  ;;  %v631_v9 = vsel %vm605_vm1, %v628_v57, %v630_v13  ;;  %v946_v55 = vsel %vm936_vm2, %v944_v38, %v945_v58  ;;  %v948_v11 = vsel %vm936_vm2, %v945_v58, %v947_v28  ;;  %v510_v12 = vpop.f32.mrf.mxu1  ;;  %v809_v17 = vpop.f32.mrf.mxu0 }
 0x105   :  { %v706_v46 = vadd.f32 %v629_v8, %v2858_v52  ;;  %v707_v50 = vadd.f32 %v631_v9, %v2862_v59  ;;  %v2929_v19 = vadd.f32 %v946_v55, %v2878_v24  ;;  %v2932_v62 = vadd.f32 %v948_v11, %v2880_v25 }
 0x106   :  { %v2336_v15 = vpop.f32.mrf.mxu1  ;;  %v2364_v16 = vpop.f32.mrf.mxu0  ;;  %v634_v26 = vrot.slane %v510_v12, 1  ;;  %v951_v28 = vrot.slane %v809_v17, 2 }
 0x107   :  { %v639_v13 = vrot.slane %v2336_v15, 1  ;;  %v956_v18 = vrot.slane %v2364_v16, 2 }
 0x108   :  { %v513_v52 = vpop.f32.mrf.mxu1  ;;  %v812_v30 = vpop.f32.mrf.mxu0 }
 0x109   :  { %v640_v59 = vsel %vm605_vm1, %v637_v61, %v639_v13  ;;  %v713_v24 = vadd.f32 %v2871_v10, %v639_v13  ;;  %v957_v25 = vsel %vm936_vm2, %v954_v42, %v956_v18  ;;  %v2941_v32 = vadd.f32 %v956_v18, %v2886_v60 }
 0x10a   :  { %v712_v51 = vadd.f32 %v2865_v1, %v640_v59  ;;  %v2946_v38 = vadd.f32 %v957_v25, %v2893_v3  ;;  %v635_v53 = vrot.slane %v513_v52, 1  ;;  %v952_v54 = vrot.slane %v812_v30, 2  ;;  %v2339_v34 = vpop.f32.mrf.mxu1  ;;  %v2367_v48 = vpop.f32.mrf.mxu0 }
 0x10b   :  { %v644_v57 = vrot.slane %v2339_v34, 1  ;;  %v961_v17 = vrot.slane %v2367_v48, 2 }
 0x10c   :  { %v636_v58 = vsel %vm605_vm1, %v634_v26, %v635_v53  ;;  %v638_v10 = vsel %vm605_vm1, %v635_v53, %v637_v61  ;;  %v953_v36 = vsel %vm936_vm2, %v951_v28, %v952_v54  ;;  %v955_v60 = vsel %vm936_vm2, %v952_v54, %v954_v42  ;;  %v526_v40 = vpop.f32.mrf.mxu1  ;;  %v825_v8 = vpop.f32.mrf.mxu0 }
 0x10d   :  { %v710_v1 = vadd.f32 %v636_v58, %v2869_v7  ;;  %v711_v3 = vadd.f32 %v638_v10, %v2873_v14  ;;  %v2955_v9 = vadd.f32 %v953_v36, %v2903_v0  ;;  %v2958_v55 = vadd.f32 %v955_v60, %v2906_v20 }
 0x10e   :  { %v2340_v11 = vpop.f32.mrf.mxu1  ;;  %v2368_v12 = vpop.f32.mrf.mxu0  ;;  %v641_v16 = vrot.slane %v526_v40, 1  ;;  %v958_v0 = vrot.slane %v825_v8, 2 }
 0x10f   :  { %v646_v61 = vrot.slane %v2340_v11, 1  ;;  %v963_v15 = vrot.slane %v2368_v12, 2 }
 0x110   :  { %v529_v13 = vpop.f32.mrf.mxu1  ;;  %v828_v42 = vpop.f32.mrf.mxu0 }
 0x111   :  { %v647_v18 = vsel %vm605_vm1, %v644_v57, %v646_v61  ;;  %v964_v7 = vsel %vm936_vm2, %v961_v17, %v963_v15  ;;  %v2963_v14 = vadd.f32 %v963_v15, %v2914_v44  ;;  %v642_v20 = vrot.slane %v529_v13, 1  ;;  %v1932_v44 = vld [vmem:[%s3444_s4] sm:$0xff] }
 0x112   :  { %v2965_v23 = vadd.f32 %v964_v7, %v708_v6  ;;  %v959_v26 = vrot.slane %v828_v42, 2  ;;  %v2343_v28 = vpop.f32.mrf.mxu1  ;;  %v2371_v52 = vpop.f32.mrf.mxu0  ;;  %2462 = vmatpush3.msra.mxu1 %v1932_v44  ;;  %v717_v44 = vadd.f32 %v2830_v31, %v646_v61 }
 0x113   :  { %v643_v30 = vsel %vm605_vm1, %v641_v16, %v642_v20  ;;  %v645_v59 = vsel %vm605_vm1, %v642_v20, %v644_v57  ;;  %v651_v58 = vrot.slane %v2343_v28, 1  ;;  %v968_v60 = vrot.slane %v2371_v52, 2 }
 0x114   :  { %v960_v25 = vsel %vm936_vm2, %v958_v0, %v959_v26  ;;  %v962_v53 = vsel %vm936_vm2, %v959_v26, %v961_v17  ;;  %v542_v54 = vpop.f32.mrf.mxu1  ;;  %v841_v34 = vpop.f32.mrf.mxu0  ;;  %v714_v31 = vadd.f32 %v643_v30, %v2828_v29  ;;  %v715_v61 = vadd.f32 %v645_v59, %v2832_v33 }
 0x115   :  { %v2974_v6 = vadd.f32 %v960_v25, %v706_v46  ;;  %v2976_v48 = vadd.f32 %v962_v53, %v707_v50  ;;  %v648_v8 = vrot.slane %v542_v54, 1  ;;  %v965_v50 = vrot.slane %v841_v34, 2 }
 0x116   :  { %v2344_v10 = vpop.f32.mrf.mxu1  ;;  %v2372_v36 = vpop.f32.mrf.mxu0 }
 0x117   :  { %v653_v57 = vrot.slane %v2344_v10, 1  ;;  %v970_v40 = vrot.slane %v2372_v36, 2 }
 0x118   :  { %v545_v11 = vpop.f32.mrf.mxu1  ;;  %v844_v12 = vpop.f32.mrf.mxu0 }
 0x119   :  { %v654_v17 = vsel %vm605_vm1, %v651_v58, %v653_v57  ;;  %v971_v46 = vsel %vm936_vm2, %v968_v60, %v970_v40  ;;  %v2981_v15 = vadd.f32 %v970_v40, %v713_v24  ;;  %v649_v13 = vrot.slane %v545_v11, 1 }
 0x11a   :  { %v2983_v16 = vadd.f32 %v971_v46, %v712_v51  ;;  %v966_v42 = vrot.slane %v844_v12, 2  ;;  %v2985_v7 = vpop.f32.mrf.mxu1  ;;  %v2375_v0 = vpop.f32.mrf.mxu0  ;;  %v720_v29 = vadd.f32 %v2834_v35, %v654_v17 }
 0x11b   :  { %v650_v20 = vsel %vm605_vm1, %v648_v8, %v649_v13  ;;  %v652_v2 = vsel %vm605_vm1, %v649_v13, %v651_v58  ;;  %v658_v51 = vrot.slane %v2985_v7, 1  ;;  %v975_v10 = vrot.slane %v2375_v0, 2 }
 0x11c   :  { %v967_v26 = vsel %vm936_vm2, %v965_v50, %v966_v42  ;;  %v969_v28 = vsel %vm936_vm2, %v966_v42, %v968_v60  ;;  %v558_v52 = vpop.f32.mrf.mxu1  ;;  %v857_v25 = vpop.f32.mrf.mxu0  ;;  %v716_v58 = vadd.f32 %v2826_v27, %v647_v18 }
 0x11d   :  { %v2991_v24 = vadd.f32 %v967_v26, %v710_v1  ;;  %v2993_v53 = vadd.f32 %v969_v28, %v711_v3  ;;  %v972_v3 = vrot.slane %v857_v25, 2  ;;  %v655_v59 = vrot.slane %v558_v52, 1 }
 0x11e   :  { %v2348_v54 = vpop.f32.mrf.mxu1  ;;  %v2376_v34 = vpop.f32.mrf.mxu0 }
 0x11f   :  { %v660_v36 = vrot.slane %v2348_v54, 1  ;;  %v977_v40 = vrot.slane %v2376_v34, 2  ;;  %v721_v34 = vadd.f32 %v2838_v39, %v653_v57  ;;  %v718_v39 = vadd.f32 %v650_v20, %v2836_v37 }
 0x120   :  { %v561_v8 = vpop.f32.mrf.mxu1  ;;  %v860_v11 = vpop.f32.mrf.mxu0  ;;  %v719_v57 = vadd.f32 %v652_v2, %v2840_v41 }
 0x121   :  { %v661_v60 = vsel %vm605_vm1, %v658_v51, %v660_v36  ;;  %v978_v1 = vsel %vm936_vm2, %v975_v10, %v977_v40  ;;  %v3000_v12 = vadd.f32 %v977_v40, %v717_v44  ;;  %v973_v50 = vrot.slane %v860_v11, 2 }
 0x122   :  { %v3002_v46 = vadd.f32 %v978_v1, %v716_v58  ;;  %v2379_v13 = vpop.f32.mrf.mxu0  ;;  %v2391_v42 = vpop.f32.mrf.mxu1  ;;  %v656_v11 = vrot.slane %v561_v8, 1 }
 0x123   :  { %v974_v27 = vsel %vm936_vm2, %v972_v3, %v973_v50  ;;  %v976_v18 = vsel %vm936_vm2, %v973_v50, %v975_v10  ;;  %v982_v44 = vrot.slane %v2379_v13, 2  ;;  %v1271_v37 = vrot.slane %v2391_v42, 3 }
 0x124   :  { %v873_v7 = vpop.f32.mrf.mxu0  ;;  %v1108_v0 = vpop.f32.mrf.mxu1  ;;  %v3008_v26 = vadd.f32 %v974_v27, %v714_v31  ;;  %v3010_v28 = vadd.f32 %v976_v18, %v715_v61  ;;  %v725_v27 = vadd.f32 %v2850_v47, %v660_v36  ;;  %v724_v47 = vadd.f32 %v2844_v43, %v661_v60 }
 0x125   :  { %v979_v1 = vrot.slane %v873_v7, 2  ;;  %v657_v7 = vsel %vm605_vm1, %v655_v59, %v656_v11 }
 0x126   :  { %v2380_v25 = vpop.f32.mrf.mxu0  ;;  %v3012_v54 = vpop.f32.mrf.mxu1 }
 0x127   :  { %v984_v40 = vrot.slane %v2380_v25, 2  ;;  %v659_v25 = vsel %vm605_vm1, %v656_v11, %v658_v51  ;;  %v1273_v41 = vrot.slane %v3012_v54, 3 }
 0x128   :  { %v876_v33 = vpop.f32.mrf.mxu0  ;;  %v1111_v30 = vpop.f32.mrf.mxu1 }
 0x129   :  { %v985_v10 = vsel %vm936_vm2, %v982_v44, %v984_v40  ;;  %v3017_v58 = vadd.f32 %v984_v40, %v721_v34  ;;  %v980_v50 = vrot.slane %v876_v33, 2  ;;  %v1268_v34 = vrot.slane %v1108_v0, 3 }
 0x12a   :  { %v3019_v3 = vadd.f32 %v985_v10, %v720_v29  ;;  %v2383_v31 = vpop.f32.mrf.mxu0  ;;  %v3021_v61 = vpop.f32.mrf.mxu1  ;;  %v722_v10 = vadd.f32 %v657_v7, %v2848_v45  ;;  %v1274_v42 = vsel %vm1267_vm4, %v1271_v37, %v1273_v41 }
 0x12b   :  { %v981_v35 = vsel %vm936_vm2, %v979_v1, %v980_v50  ;;  %v983_v17 = vsel %vm936_vm2, %v980_v50, %v982_v44  ;;  %v1269_v44 = vrot.slane %v1111_v30, 3  ;;  %v989_v40 = vrot.slane %v2383_v31, 2 }
 0x12c   :  { %v889_v52 = vpop.f32.mrf.mxu0  ;;  %v1124_v13 = vpop.f32.mrf.mxu1  ;;  %v3028_v8 = vadd.f32 %v981_v35, %v718_v39  ;;  %v3030_v18 = vadd.f32 %v983_v17, %v719_v57  ;;  %v723_v1 = vadd.f32 %v659_v25, %v2854_v49  ;;  %v1278_v45 = vrot.slane %v3021_v61, 3 }
 0x12d   :  { %v986_v54 = vrot.slane %v889_v52, 2  ;;  %v1270_v43 = vsel %vm1267_vm4, %v1268_v34, %v1269_v44  ;;  %v1272_v60 = vsel %vm1267_vm4, %v1269_v44, %v1271_v37  ;;  %v1275_v49 = vrot.slane %v1124_v13, 3 }
 0x12e   :  { %v2384_v20 = vpop.f32.mrf.mxu0  ;;  %v2396_v2 = vpop.f32.mrf.mxu1  ;;  %v1359_v37 = vadd.f32 %v1273_v41, %v2889_v63  ;;  %v1356_v61 = vadd.f32 %v1270_v43, %v2908_v21  ;;  %v1357_v34 = vadd.f32 %v1272_v60, %v2910_v22  ;;  %v3067_v63 = vld [vmem:[%s3442_s2] ss:$0 sm:$0xff] }
 0x12f   :  { %v991_v29 = vrot.slane %v2384_v20, 2  ;;  %v1280_v31 = vrot.slane %v2396_v2, 3  ;;  %v1358_v20 = vadd.f32 %v1274_v42, %v2895_v4 }
 0x130   :  { %v892_v36 = vpop.f32.mrf.mxu0  ;;  %v1127_v33 = vpop.f32.mrf.mxu1 }
 0x131   :  { %v992_v59 = vsel %vm936_vm2, %v989_v40, %v991_v29  ;;  %v3039_v51 = vadd.f32 %v991_v29, %v725_v27  ;;  %v987_v0 = vrot.slane %v892_v36, 2  ;;  %v1276_v35 = vrot.slane %v1127_v33, 3 }
 0x132   :  { %v3042_v11 = vadd.f32 %v992_v59, %v724_v47  ;;  %v3044_v30 = vpop.f32.mrf.mxu1  ;;  %v2427_v50 = vpop.f32.mrf.mxu0  ;;  %v1281_v47 = vsel %vm1267_vm4, %v1278_v45, %v1280_v31  ;;  %v1363_v36 = vadd.f32 %v1280_v31, %v2917_v5 }
 0x133   :  { %v988_v39 = vsel %vm936_vm2, %v986_v54, %v987_v0  ;;  %v990_v57 = vsel %vm936_vm2, %v987_v0, %v989_v40  ;;  %v1285_v25 = vrot.slane %v3044_v30, 3  ;;  %v1602_v44 = vrot.slane %v2427_v50, 4 }
 0x134   :  { %v1140_v17 = vpop.f32.mrf.mxu1  ;;  %v1439_v52 = vpop.f32.mrf.mxu0  ;;  %v3051_v27 = vadd.f32 %v988_v39, %v722_v10  ;;  %v3053_v7 = vadd.f32 %v990_v57, %v723_v1  ;;  %v1277_v33 = vsel %vm1267_vm4, %v1275_v49, %v1276_v35  ;;  %v1279_v4 = vsel %vm1267_vm4, %v1276_v35, %v1278_v45 }
 0x135   :  { %v1282_v22 = vrot.slane %v1140_v17, 3  ;;  %v1599_v42 = vrot.slane %v1439_v52, 4  ;;  %v1362_v43 = vadd.f32 %v1281_v47, %v2920_v56  ;;  %v3077_v60 = vadd.f32 %v1277_v33, %v2929_v19  ;;  %v3093_v56 = vld [vmem:[%s3443_s3 + $0x18] sm:$0xf] }
 0x136   :  { %v2400_v13 = vpop.f32.mrf.mxu1  ;;  %v2428_v2 = vpop.f32.mrf.mxu0  ;;  %v3080_v45 = vadd.f32 %v1279_v4, %v2932_v62 }
 0x137   :  { %v1287_v40 = vrot.slane %v2400_v13, 3  ;;  %v1604_v29 = vrot.slane %v2428_v2, 4 }
 0x138   :  { %v1143_v21 = vpop.f32.mrf.mxu1  ;;  %v1442_v41 = vpop.f32.mrf.mxu0 }
 0x139   :  { %v1288_v10 = vsel %vm1267_vm4, %v1285_v25, %v1287_v40  ;;  %v1605_v1 = vsel %vm1598_vm5, %v1602_v44, %v1604_v29  ;;  %v1690_v59 = vadd.f32 %v1604_v29, %v1359_v37  ;;  %v1283_v54 = vrot.slane %v1143_v21, 3 }
 0x13a   :  { %v1689_v5 = vadd.f32 %v1605_v1, %v1358_v20  ;;  %v1600_v0 = vrot.slane %v1442_v41, 4  ;;  %v3071_v30 = vpop.f32.mrf.mxu1  ;;  %v3073_v50 = vpop.f32.mrf.mxu0  ;;  %v3084_v31 = vadd.f32 %v1288_v10, %v2946_v38  ;;  %v3087_v39 = vadd.f32 %v1287_v40, %v2941_v32  ;;  %v3099_v38 = vld [vmem:[%s3443_s3 + $0x10] sm:$0xff] }
 0x13b   :  { %v1729_v49 = vadd.f32 %v3067_v63, %v1690_v59  ;;  %v1284_v32 = vsel %vm1267_vm4, %v1282_v22, %v1283_v54  ;;  %v1292_v20 = vrot.slane %v3071_v30, 3  ;;  %v1286_v13 = vsel %vm1267_vm4, %v1283_v54, %v1285_v25  ;;  %v3119_v59 = vld [vmem:[%s3443_s3] sm:$0xff] }
 0x13c   :  { %v1728_v57 = vadd.f32 %v3067_v63, %v1689_v5  ;;  %v1601_v19 = vsel %vm1598_vm5, %v1599_v42, %v1600_v0  ;;  %v1156_v35 = vpop.f32.mrf.mxu1  ;;  %v1455_v62 = vpop.f32.mrf.mxu0  ;;  %v1603_v52 = vsel %vm1598_vm5, %v1600_v0, %v1602_v44  ;;  %v1609_v4 = vrot.slane %v3073_v50, 4  ;;  %v3124_v42 = vld [vmem:[%s3443_s3 + $0x8] sm:$0xff] }
 0x13d   :  { %v1761_v17 = vmax.f32 %v1729_v49, 0.0  ;;  %v1687_v2 = vadd.f32 %v1601_v19, %v1356_v61  ;;  %v1688_v40 = vadd.f32 %v1603_v52, %v1357_v34  ;;  %v3109_v22 = vadd.f32 %v1284_v32, %v2955_v9 }
 0x13e   :  { %v1760_v37 = vmax.f32 %v1728_v57, 0.0  ;;  %v2404_v29 = vpop.f32.mrf.mxu1  ;;  %v2432_v47 = vpop.f32.mrf.mxu0  ;;  %v3114_v34 = vadd.f32 %v1286_v13, %v2958_v55  ;;  %v1289_v9 = vrot.slane %v1156_v35, 3  ;;  %v1606_v5 = vrot.slane %v1455_v62, 4 }
 0x13f   :  { %v1797_v33 = vmul.f32 %v3093_v56, %v1761_v17  ;;  %v1294_v21 = vrot.slane %v2404_v29, 3  ;;  %v1611_v41 = vrot.slane %v2432_v47, 4  ;;  %v1726_v44 = vadd.f32 %v3067_v63, %v1687_v2 }
 0x140   :  { %v1796_v10 = vmul.f32 %v3099_v38, %v1760_v37  ;;  %v1727_v1 = vadd.f32 %v3067_v63, %v1688_v40  ;;  %v1159_v25 = vpop.f32.mrf.mxu1  ;;  %v1458_v61 = vpop.f32.mrf.mxu0 }
 0x141   :  { %v1612_v54 = vsel %vm1598_vm5, %v1609_v4, %v1611_v41  ;;  %v1833_v0 = vsel %vm1832_vm6, %v1797_v33, -inf  ;;  %v1758_v30 = vmax.f32 %v1726_v44, 0.0  ;;  %v1295_v55 = vsel %vm1267_vm4, %v1292_v20, %v1294_v21 }
 0x142   :  { %v1759_v50 = vmax.f32 %v1727_v1, 0.0  ;;  %v3129_v49 = vpop.f32.mrf.mxu1  ;;  %v3131_v57 = vpop.f32.mrf.mxu0  ;;  %v1693_v19 = vadd.f32 %v1612_v54, %v1362_v43  ;;  %v1694_v17 = vadd.f32 %v1611_v41, %v1363_v36  ;;  %v1290_v32 = vrot.slane %v1159_v25, 3 }
 0x143   :  { %v1607_v52 = vrot.slane %v1458_v61, 4  ;;  %v1830_v37 = vsel %vm1826_vm7, %v1796_v10, -inf  ;;  %v1794_v35 = vmul.f32 %v3119_v59, %v1758_v30  ;;  %v3137_v13 = vadd.f32 %v1294_v21, %v2963_v14 }
 0x144   :  { %v1795_v62 = vmul.f32 %v3124_v42, %v1759_v50  ;;  %v1172_v2 = vpop.f32.mrf.mxu1  ;;  %v3139_v40 = vpop.f32.mrf.mxu0  ;;  %v3142_v29 = vadd.f32 %v1295_v55, %v2965_v23  ;;  %v1732_v43 = vadd.f32 %v3067_v63, %v1693_v19  ;;  %v1733_v36 = vadd.f32 %v3067_v63, %v1694_v17 }
 0x145   :  { %v1291_v47 = vsel %vm1267_vm4, %v1289_v9, %v1290_v32  ;;  %v1827_v33 = vsel %vm1826_vm7, %v1794_v35, -inf  ;;  %v1293_v10 = vsel %vm1267_vm4, %v1290_v32, %v1292_v20  ;;  %v1299_v14 = vrot.slane %v3129_v49, 3 }
 0x146   :  { %v1828_v41 = vsel %vm1826_vm7, %v1795_v62, -inf  ;;  %v2408_v21 = vpop.f32.mrf.mxu1  ;;  %v2436_v44 = vpop.f32.mrf.mxu0  ;;  %v1764_v25 = vmax.f32 %v1732_v43, 0.0  ;;  %v1765_v23 = vmax.f32 %v1733_v36, 0.0  ;;  %v1608_v61 = vsel %vm1598_vm5, %v1606_v5, %v1607_v52 }
 0x147   :  { %v1829_v1 = vmax.f32 %v1827_v33, %v1828_v41  ;;  %v3153_v54 = vadd.f32 %v1291_v47, %v2974_v6  ;;  %v1610_v9 = vsel %vm1598_vm5, %v1607_v52, %v1609_v4  ;;  %v1691_v30 = vadd.f32 %v1608_v61, %v3077_v60 }
 0x148   :  { %v1616_v50 = vrot.slane %v3131_v57, 4  ;;  %v1175_v55 = vpop.f32.mrf.mxu1  ;;  %v1474_v20 = vpop.f32.mrf.mxu0  ;;  %v1800_v49 = vmul.f32 %v3099_v38, %v1764_v25  ;;  %v3160_v17 = vadd.f32 %v1293_v10, %v2976_v48  ;;  %v1692_v32 = vadd.f32 %v1610_v9, %v3080_v45 }
 0x149   :  { %v1831_v19 = vmax.f32 %v1829_v1, %v1830_v37  ;;  %v1801_v5 = vmul.f32 %v3093_v56, %v1765_v23  ;;  %v1730_v6 = vadd.f32 %v3067_v63, %v1691_v30  ;;  %v1301_v35 = vrot.slane %v2408_v21, 3 }
 0x14a   :  { %v1618_v4 = vrot.slane %v2436_v44, 4  ;;  %v3165_v52 = vpop.f32.mrf.mxu1  ;;  %v3167_v60 = vpop.f32.mrf.mxu0  ;;  %v1731_v37 = vadd.f32 %v3067_v63, %v1692_v32  ;;  %v1296_v62 = vrot.slane %v1172_v2, 3  ;;  %v1613_v43 = vrot.slane %v3139_v40, 4 }
 0x14b   :  { %v1834_v57 = vmax.f32 %v1831_v19, %v1833_v0  ;;  %v1762_v48 = vmax.f32 %v1730_v6, 0.0  ;;  %v1302_v36 = vsel %vm1267_vm4, %v1299_v14, %v1301_v35  ;;  %v1297_v47 = vrot.slane %v1175_v55, 3 }
 0x14c   :  { %v1619_v45 = vsel %vm1598_vm5, %v1616_v50, %v1618_v4  ;;  %v3173_v33 = vpop.f32.mrf.mxu1  ;;  %v3175_v41 = vpop.f32.mrf.mxu0  ;;  %v1844_v21 = vsel %vm1826_vm7, %v1800_v49, -inf  ;;  %v1763_v44 = vmax.f32 %v1731_v37, 0.0  ;;  %v1846_v2 = vsel %vm1832_vm6, %v1801_v5, -inf }
 0x14d   :  { %v1835_v10 = vrot.slane %v1834_v57, 4  ;;  %v1697_v0 = vadd.f32 %v1619_v45, %v3084_v31  ;;  %v1798_v40 = vmul.f32 %v3119_v59, %v1762_v48  ;;  %v3182_v1 = vadd.f32 %v1301_v35, %v2981_v15 }
 0x14e   :  { %v1698_v25 = vadd.f32 %v1618_v4, %v3087_v39  ;;  %v3185_v23 = vpop.f32.mrf.mxu1  ;;  %v2440_v61 = vpop.f32.mrf.mxu0  ;;  %v1799_v30 = vmul.f32 %v3124_v42, %v1763_v44  ;;  %v3189_v55 = vadd.f32 %v1302_v36, %v2983_v16  ;;  %v1298_v15 = vsel %vm1267_vm4, %v1296_v62, %v1297_v47 }
 0x14f   :  { %v1836_v9 = vmax.f32 %v1834_v57, %v1835_v10  ;;  %v1736_v31 = vadd.f32 %v3067_v63, %v1697_v0  ;;  %v1841_v19 = vsel %vm1826_vm7, %v1798_v40, -inf  ;;  %v1614_v32 = vrot.slane %v1474_v20, 4 }
 0x150   :  { %v1737_v49 = vadd.f32 %v3067_v63, %v1698_v25  ;;  %v1191_v5 = vpop.f32.mrf.mxu1  ;;  %v3195_v39 = vpop.f32.mrf.mxu0  ;;  %v1842_v35 = vsel %vm1826_vm7, %v1799_v30, -inf  ;;  %v1300_v57 = vsel %vm1267_vm4, %v1297_v47, %v1299_v14  ;;  %v3210_v47 = vadd.f32 %v1298_v15, %v2991_v24 }
 0x151   :  { %v1837_v6 = vrot.slane %v1836_v9, 2  ;;  %v1768_v4 = vmax.f32 %v1736_v31, 0.0  ;;  %v1843_v16 = vmax.f32 %v1841_v19, %v1842_v35  ;;  %v1615_v48 = vsel %vm1598_vm5, %v1613_v43, %v1614_v32 }
 0x152   :  { %v1769_v37 = vmax.f32 %v1737_v49, 0.0  ;;  %v1617_v36 = vsel %vm1598_vm5, %v1614_v32, %v1616_v50  ;;  %v3201_v45 = vpop.f32.mrf.mxu1  ;;  %v3203_v10 = vpop.f32.mrf.mxu0  ;;  %v1695_v44 = vadd.f32 %v1615_v48, %v3109_v22  ;;  %v3213_v43 = vadd.f32 %v1300_v57, %v2993_v53 }
 0x153   :  { %v1838_v20 = vmax.f32 %v1836_v9, %v1837_v6  ;;  %v1804_v62 = vmul.f32 %v3099_v38, %v1768_v4  ;;  %v1696_v0 = vadd.f32 %v1617_v36, %v3114_v34  ;;  %v1845_v40 = vmax.f32 %v1843_v16, %v1844_v21 }
 0x154   :  { %v1805_v14 = vmul.f32 %v3093_v56, %v1769_v37  ;;  %v3215_v50 = vpop.f32.mrf.mxu0  ;;  %v1734_v25 = vadd.f32 %v3067_v63, %v1695_v44  ;;  %v1306_v30 = vrot.slane %v3165_v52, 3  ;;  %v1623_v22 = vrot.slane %v3167_v60, 4  ;;  %v3221_v34 = vpop.f32.mrf.mxu1 }
 0x155   :  { %v1735_v9 = vadd.f32 %v3067_v63, %v1696_v0  ;;  %v1839_v21 = vrot.slane %v1838_v20, 1  ;;  %v1847_v31 = vmax.f32 %v1845_v40, %v1846_v2  ;;  %v1303_v24 = vrot.slane %v3173_v33, 3 }
 0x156   :  { %v1308_v19 = vrot.slane %v3185_v23, 3  ;;  %v3225_v53 = vpop.f32.mrf.mxu0  ;;  %v1857_v49 = vsel %vm1826_vm7, %v1804_v62, -inf  ;;  %v1766_v15 = vmax.f32 %v1734_v25, 0.0  ;;  %v1625_v6 = vrot.slane %v2440_v61, 4  ;;  %v3236_v37 = vpop.f32.mrf.mxu1 }
 0x157   :  { %v1767_v32 = vmax.f32 %v1735_v9, 0.0  ;;  %v1848_v35 = vrot.slane %v1847_v31, 4  ;;  %v1859_v52 = vsel %vm1832_vm6, %v1805_v14, -inf  ;;  %v1620_v60 = vrot.slane %v3175_v41, 4 }
 0x158   :  { %v1304_v4 = vrot.slane %v1191_v5, 3  ;;  %v3230_v57 = vpop.f32.mrf.mxu0  ;;  %v1802_v2 = vmul.f32 %v3119_v59, %v1766_v15  ;;  %v1309_v23 = vsel %vm1267_vm4, %v1306_v30, %v1308_v19  ;;  %v1626_v16 = vsel %vm1598_vm5, %v1623_v22, %v1625_v6 }
 0x159   :  { %v1803_v33 = vmul.f32 %v3124_v42, %v1767_v32  ;;  %v1849_v48 = vmax.f32 %v1847_v31, %v1848_v35  ;;  %v1701_v61 = vadd.f32 %v1626_v16, %v3142_v29  ;;  %v1702_v36 = vadd.f32 %v1625_v6, %v3137_v13 }
 0x15a   :  { %v1305_v41 = vsel %vm1267_vm4, %v1303_v24, %v1304_v4  ;;  %v3241_v5 = vpop.f32.mrf.mxu0  ;;  %v3243_v62 = vmax.f32 %v1838_v20, %v1839_v21  ;;  %v1854_v44 = vsel %vm1826_vm7, %v1802_v2, -inf  ;;  %v1307_v40 = vsel %vm1267_vm4, %v1304_v4, %v1306_v30  ;;  %v1207_v30 = vpop.f32.mrf.mxu1 }
 0x15b   :  { %v1855_v0 = vsel %vm1826_vm7, %v1803_v33, -inf  ;;  %v1850_v14 = vrot.slane %v1849_v48, 2  ;;  %v1740_v9 = vadd.f32 %v3067_v63, %v1701_v61  ;;  %v1741_v29 = vadd.f32 %v3067_v63, %v1702_v36 }
 0x15c   :  { %v1856_v25 = vmax.f32 %v1854_v44, %v1855_v0  ;;  %v3250_v31 = vpop.f32.mrf.mxu0  ;;  %v3253_v13 = vadd.f32 %v1309_v23, %v3002_v46  ;;  %v3256_v20 = vadd.f32 %v1308_v19, %v3000_v12  ;;  %v3259_v21 = vadd.f32 %v1305_v41, %v3008_v26  ;;  %v3278_v61 = vpop.f32.mrf.mxu1 }
 0x15d   :  { %v1621_v24 = vrot.slane %v3195_v39, 4  ;;  %v1851_v15 = vmax.f32 %v1849_v48, %v1850_v14  ;;  %v1772_v6 = vmax.f32 %v1740_v9, 0.0  ;;  %v1773_v35 = vmax.f32 %v1741_v29, 0.0 }
 0x15e   :  { %v1858_v32 = vmax.f32 %v1856_v25, %v1857_v49  ;;  %v3262_v4 = vpop.f32.mrf.mxu0  ;;  %v3265_v2 = vadd.f32 %v1307_v40, %v3010_v28  ;;  %v1313_v19 = vrot.slane %v3201_v45, 3  ;;  %v1630_v23 = vrot.slane %v3203_v10, 4  ;;  %v3294_v9 = vpop.f32.mrf.mxu1 }
 0x15f   :  { %v1622_v46 = vsel %vm1598_vm5, %v1620_v60, %v1621_v24  ;;  %v1624_v12 = vsel %vm1598_vm5, %v1621_v24, %v1623_v22  ;;  %v1852_v26 = vrot.slane %v1851_v15, 1  ;;  %v1808_v39 = vmul.f32 %v3099_v38, %v1772_v6 }
 0x160   :  { %v1860_v33 = vmax.f32 %v1858_v32, %v1859_v52  ;;  %v3272_v49 = vpop.f32.mrf.mxu0  ;;  %v1699_v16 = vadd.f32 %v1622_v46, %v3153_v54  ;;  %v1700_v48 = vadd.f32 %v1624_v12, %v3160_v17  ;;  %v1315_v28 = vrot.slane %v3236_v37, 3 }
 0x161   :  { %v1632_v60 = vrot.slane %v3225_v53, 4  ;;  %v1809_v45 = vmul.f32 %v3093_v56, %v1773_v35  ;;  %v1310_v52 = vrot.slane %v3221_v34, 3  ;;  %v1627_v36 = vrot.slane %v3215_v50, 4 }
 0x162   :  { %v1861_v22 = vrot.slane %v1860_v33, 4  ;;  %v3283_v10 = vpop.f32.mrf.mxu0  ;;  %v3285_v41 = vmax.f32 %v1851_v15, %v1852_v26  ;;  %v1870_v54 = vsel %vm1826_vm7, %v1808_v39, -inf  ;;  %v1738_v17 = vadd.f32 %v3067_v63, %v1699_v16 }
 0x163   :  { %v1739_v37 = vadd.f32 %v3067_v63, %v1700_v48  ;;  %v1316_v44 = vsel %vm1267_vm4, %v1313_v19, %v1315_v28  ;;  %v1633_v0 = vsel %vm1598_vm5, %v1630_v23, %v1632_v60  ;;  %v1706_v40 = vadd.f32 %v1632_v60, %v3182_v1  ;;  %v2420_v60 = vpop.f32.mrf.mxu1 }
 0x164   :  { %v1862_v53 = vmax.f32 %v1860_v33, %v1861_v22  ;;  %v1770_v34 = vmax.f32 %v1738_v17, 0.0  ;;  %v1705_v50 = vadd.f32 %v1633_v0, %v3189_v55  ;;  %v1311_v25 = vrot.slane %v1207_v30, 3  ;;  %v3296_v29 = vpop.f32.mrf.mxu0 }
 0x165   :  { %v1771_v14 = vmax.f32 %v1739_v37, 0.0  ;;  %v1872_v15 = vsel %vm1832_vm6, %v1809_v45, -inf  ;;  %v1745_v32 = vadd.f32 %v3067_v63, %v1706_v40  ;;  %v1628_v6 = vrot.slane %v3230_v57, 4 }
 0x166   :  { %v1863_v24 = vrot.slane %v1862_v53, 2  ;;  %v1806_v35 = vmul.f32 %v3119_v59, %v1770_v34  ;;  %v3304_v46 = vadd.f32 %v1315_v28, %v3017_v58  ;;  %v1744_v55 = vadd.f32 %v3067_v63, %v1705_v50  ;;  %v3314_v22 = vpop.f32.mrf.mxu0 }
 0x167   :  { %v1807_v1 = vmul.f32 %v3124_v42, %v1771_v14  ;;  %v3308_v12 = vadd.f32 %v1316_v44, %v3019_v3  ;;  %v1777_v26 = vmax.f32 %v1745_v32, 0.0  ;;  %v1312_v33 = vsel %vm1267_vm4, %v1310_v52, %v1311_v25 }
 0x168   :  { %v1864_v30 = vmax.f32 %v1862_v53, %v1863_v24  ;;  %v1867_v39 = vsel %vm1826_vm7, %v1806_v35, -inf  ;;  %v1776_v16 = vmax.f32 %v1744_v55, 0.0  ;;  %v1314_v48 = vsel %vm1267_vm4, %v1311_v25, %v1313_v19  ;;  %v3334_v50 = vpop.f32.mrf.mxu0 }
 0x169   :  { %v1868_v57 = vsel %vm1826_vm7, %v1807_v1, -inf  ;;  %v1813_v45 = vmul.f32 %v3093_v56, %v1777_v26  ;;  %v1629_v3 = vsel %vm1598_vm5, %v1627_v36, %v1628_v6  ;;  %v1631_v52 = vsel %vm1598_vm5, %v1628_v6, %v1630_v23 }
 0x16a   :  { %v1865_v58 = vrot.slane %v1864_v30, 1  ;;  %v1869_v28 = vmax.f32 %v1867_v39, %v1868_v57  ;;  %v1812_v17 = vmul.f32 %v3099_v38, %v1776_v16  ;;  %v1703_v37 = vadd.f32 %v1629_v3, %v3210_v47  ;;  %v1223_v47 = vpop.f32.mrf.mxu1  ;;  %v3346_v26 = vpop.f32.mrf.mxu0 }
 0x16b   :  { %v1320_v53 = vrot.slane %v3278_v61, 3  ;;  %v3323_v19 = vadd.f32 %v1312_v33, %v3028_v8  ;;  %v3326_v0 = vadd.f32 %v1314_v48, %v3030_v18  ;;  %v1704_v40 = vadd.f32 %v1631_v52, %v3213_v43 }
 0x16c   :  { %v1871_v44 = vmax.f32 %v1869_v28, %v1870_v54  ;;  %v3329_v34 = vmax.f32 %v1864_v30, %v1865_v58  ;;  %v1885_v36 = vsel %vm1832_vm6, %v1813_v45, -inf  ;;  %v1742_v14 = vadd.f32 %v3067_v63, %v1703_v37 }
 0x16d   :  { %v1637_v23 = vrot.slane %v3241_v5, 4  ;;  %v1743_v8 = vadd.f32 %v3067_v63, %v1704_v40  ;;  %v1322_v54 = vrot.slane %v2420_v60, 3  ;;  %v1639_v18 = vrot.slane %v3262_v4, 4 }
 0x16e   :  { %v1873_v61 = vmax.f32 %v1871_v44, %v1872_v15  ;;  %v1883_v25 = vsel %vm1826_vm7, %v1812_v17, -inf  ;;  %v1774_v43 = vmax.f32 %v1742_v14, 0.0  ;;  %v1317_v24 = vrot.slane %v3294_v9, 3 }
 0x16f   :  { %v1634_v32 = vrot.slane %v3250_v31, 4  ;;  %v1775_v35 = vmax.f32 %v1743_v8, 0.0  ;;  %v1323_v5 = vsel %vm1267_vm4, %v1320_v53, %v1322_v54  ;;  %v1318_v1 = vrot.slane %v1223_v47, 3 }
 0x170   :  { %v1874_v6 = vrot.slane %v1873_v61, 4  ;;  %v1810_v55 = vmul.f32 %v3119_v59, %v1774_v43  ;;  %v1640_v15 = vsel %vm1598_vm5, %v1637_v23, %v1639_v18  ;;  %v1710_v30 = vadd.f32 %v1639_v18, %v3256_v20 }
 0x171   :  { %v1635_v4 = vrot.slane %v3272_v49, 4  ;;  %v1811_v9 = vmul.f32 %v3124_v42, %v1775_v35  ;;  %v1709_v31 = vadd.f32 %v1640_v15, %v3253_v13  ;;  %v1644_v39 = vrot.slane %v3283_v10, 4 }
 0x172   :  { %v1875_v33 = vmax.f32 %v1873_v61, %v1874_v6  ;;  %v1880_v57 = vsel %vm1826_vm7, %v1810_v55, -inf  ;;  %v3353_v16 = vadd.f32 %v1323_v5, %v3042_v11  ;;  %v3356_v48 = vadd.f32 %v1322_v54, %v3039_v51  ;;  %v3364_v11 = vpop.f32.mrf.mxu0 }
 0x173   :  { %v1749_v20 = vadd.f32 %v3067_v63, %v1710_v30  ;;  %v1881_v60 = vsel %vm1826_vm7, %v1811_v9, -inf  ;;  %v1748_v58 = vadd.f32 %v3067_v63, %v1709_v31  ;;  %v1319_v28 = vsel %vm1267_vm4, %v1317_v24, %v1318_v1 }
 0x174   :  { %v1876_v49 = vrot.slane %v1875_v33, 2  ;;  %v1882_v13 = vmax.f32 %v1880_v57, %v1881_v60  ;;  %v1636_v10 = vsel %vm1598_vm5, %v1634_v32, %v1635_v4  ;;  %v1638_v3 = vsel %vm1598_vm5, %v1635_v4, %v1637_v23 }
 0x175   :  { %v1781_v45 = vmax.f32 %v1749_v20, 0.0  ;;  %v1780_v17 = vmax.f32 %v1748_v58, 0.0  ;;  %v1321_v51 = vsel %vm1267_vm4, %v1318_v1, %v1320_v53  ;;  %v1707_v52 = vadd.f32 %v1636_v10, %v3259_v21 }
 0x176   :  { %v1708_v37 = vadd.f32 %v1638_v3, %v3265_v2  ;;  %v3369_v44 = vmax.f32 %v1875_v33, %v1876_v49  ;;  %v1884_v40 = vmax.f32 %v1882_v13, %v1883_v25  ;;  %v1646_v47 = vrot.slane %v3314_v22, 4  ;;  %v2456_v25 = vpop.f32.mrf.mxu0 }
 0x177   :  { %v1817_v14 = vmul.f32 %v3093_v56, %v1781_v45  ;;  %v1816_v61 = vmul.f32 %v3099_v38, %v1780_v17  ;;  %v1384_v23 = vadd.f32 %v1319_v28, %v3051_v27  ;;  %v1746_v8 = vadd.f32 %v3067_v63, %v1707_v52 }
 0x178   :  { %v1747_v54 = vadd.f32 %v3067_v63, %v1708_v37  ;;  %v1886_v53 = vmax.f32 %v1884_v40, %v1885_v36  ;;  %v1385_v21 = vadd.f32 %v1321_v51, %v3053_v7  ;;  %v1647_v2 = vsel %vm1598_vm5, %v1644_v39, %v1646_v47  ;;  %v1554_v30 = vpop.f32.mrf.mxu0 }
 0x179   :  { %v1714_v18 = vadd.f32 %v1646_v47, %v3304_v46  ;;  %v1778_v43 = vmax.f32 %v1746_v8, 0.0  ;;  %v1641_v22 = vrot.slane %v3296_v29, 4  ;;  %v1713_v32 = vadd.f32 %v1647_v2, %v3308_v12 }
 0x17a   :  { %v1779_v24 = vmax.f32 %v1747_v54, 0.0  ;;  %v1878_v27 = vrot.slane %v3369_v44, 1  ;;  %v1887_v6 = vrot.slane %v1886_v53, 4  ;;  %v1898_v35 = vsel %vm1832_vm6, %v1817_v14, -inf }
 0x17b   :  { %v1642_v36 = vrot.slane %v3334_v50, 4  ;;  %v1896_v7 = vsel %vm1826_vm7, %v1816_v61, -inf  ;;  %v1814_v5 = vmul.f32 %v3119_v59, %v1778_v43  ;;  %v1752_v1 = vadd.f32 %v3067_v63, %v1713_v32 }
 0x17c   :  { %v1815_v46 = vmul.f32 %v3124_v42, %v1779_v24  ;;  %v1888_v55 = vmax.f32 %v1886_v53, %v1887_v6  ;;  %v1753_v29 = vadd.f32 %v3067_v63, %v1714_v18  ;;  %v1651_v49 = vrot.slane %v3346_v26, 4 }
 0x17d   :  { %v1643_v12 = vsel %vm1598_vm5, %v1641_v22, %v1642_v36  ;;  %v1645_v15 = vsel %vm1598_vm5, %v1642_v36, %v1644_v39  ;;  %v1893_v4 = vsel %vm1826_vm7, %v1814_v5, -inf  ;;  %v1784_v33 = vmax.f32 %v1752_v1, 0.0 }
 0x17e   :  { %v1894_v50 = vsel %vm1826_vm7, %v1815_v46, -inf  ;;  %v1711_v9 = vadd.f32 %v1643_v12, %v3323_v19  ;;  %v1889_v31 = vrot.slane %v1888_v55, 2  ;;  %v1712_v20 = vadd.f32 %v1645_v15, %v3326_v0 }
 0x17f   :  { %v1895_v57 = vmax.f32 %v1893_v4, %v1894_v50  ;;  %v1648_v58 = vrot.slane %v3364_v11, 4  ;;  %v1653_v39 = vrot.slane %v2456_v25, 4  ;;  %v1649_v28 = vrot.slane %v1554_v30, 4 }
 0x180   :  { %v1750_v60 = vadd.f32 %v3067_v63, %v1711_v9  ;;  %v1785_v45 = vmax.f32 %v1753_v29, 0.0  ;;  %v1820_v10 = vmul.f32 %v3099_v38, %v1784_v33  ;;  %v1751_v19 = vadd.f32 %v3067_v63, %v1712_v20 }
 0x181   :  { %v1897_v13 = vmax.f32 %v1895_v57, %v1896_v7  ;;  %v1890_v3 = vmax.f32 %v1888_v55, %v1889_v31  ;;  %v1654_v0 = vsel %vm1598_vm5, %v1651_v49, %v1653_v39  ;;  %v1718_v26 = vadd.f32 %v1653_v39, %v3356_v48 }
 0x182   :  { %v1782_v17 = vmax.f32 %v1750_v60, 0.0  ;;  %v1783_v52 = vmax.f32 %v1751_v19, 0.0  ;;  %v1717_v11 = vadd.f32 %v1654_v0, %v3353_v16  ;;  %v1650_v37 = vsel %vm1598_vm5, %v1648_v58, %v1649_v28 }
 0x183   :  { %v1899_v51 = vmax.f32 %v1897_v13, %v1898_v35  ;;  %v1757_v14 = vadd.f32 %v3067_v63, %v1718_v26  ;;  %v1652_v47 = vsel %vm1598_vm5, %v1649_v28, %v1651_v49  ;;  %v1715_v61 = vadd.f32 %v1650_v37, %v1384_v23 }
 0x184   :  { %v1818_v40 = vmul.f32 %v3119_v59, %v1782_v17  ;;  %v1819_v54 = vmul.f32 %v3124_v42, %v1783_v52  ;;  %v1756_v53 = vadd.f32 %v3067_v63, %v1717_v11  ;;  %v1716_v48 = vadd.f32 %v1652_v47, %v1385_v21 }
 0x185   :  { %v1900_v8 = vrot.slane %v1899_v51, 4  ;;  %v1821_v2 = vmul.f32 %v3093_v56, %v1785_v45  ;;  %v1909_v18 = vsel %vm1826_vm7, %v1820_v10, -inf  ;;  %v1754_v25 = vadd.f32 %v3067_v63, %v1715_v61 }
 0x186   :  { %v1906_v16 = vsel %vm1826_vm7, %v1818_v40, -inf  ;;  %v1907_v24 = vsel %vm1826_vm7, %v1819_v54, -inf  ;;  %v1788_v22 = vmax.f32 %v1756_v53, 0.0  ;;  %v1755_v23 = vadd.f32 %v3067_v63, %v1716_v48 }
 0x187   :  { %v1901_v43 = vmax.f32 %v1899_v51, %v1900_v8  ;;  %v1908_v32 = vmax.f32 %v1906_v16, %v1907_v24  ;;  %v1786_v6 = vmax.f32 %v1754_v25, 0.0  ;;  %v1879_v35 = vmax.f32 %v3369_v44, %v1878_v27  ;;  %v2180_v51 = vld [vmem:[%s3445_s5] ss:$0 sm:$0xff] }
 0x188   :  { %v1891_v36 = vrot.slane %v1890_v3, 1  ;;  %v1789_v21 = vmax.f32 %v1757_v14, 0.0  ;;  %v1787_v7 = vmax.f32 %v1755_v23, 0.0  ;;  %v1951_v46 = vsel %vm1950_vm8, %v3285_v41, %v3243_v62 }
 0x189   :  { %v1902_v5 = vrot.slane %v1901_v43, 2  ;;  %v1911_v1 = vsel %vm1832_vm6, %v1821_v2, -inf  ;;  %v1910_v55 = vmax.f32 %v1908_v32, %v1909_v18  ;;  %v1822_v29 = vmul.f32 %v3119_v59, %v1786_v6 }
 0x18a   :  { %v1892_v12 = vmax.f32 %v1890_v3, %v1891_v36  ;;  %v1824_v63 = vmul.f32 %v3099_v38, %v1788_v22  ;;  %v1823_v15 = vmul.f32 %v3124_v42, %v1787_v7  ;;  %v1953_v44 = vsel %vm1952_vm9, %v3329_v34, %v1951_v46 }
 0x18b   :  { %v1903_v30 = vmax.f32 %v1901_v43, %v1902_v5  ;;  %v1912_v27 = vmax.f32 %v1910_v55, %v1911_v1  ;;  %v1919_v4 = vsel %vm1826_vm7, %v1822_v29, -inf  ;;  %v1955_v50 = vsel %vm1954_vm10, %v1879_v35, %v1953_v44 }
 0x18c   :  { %v1825_v62 = vmul.f32 %v3093_v56, %v1789_v21  ;;  %v1920_v41 = vsel %vm1826_vm7, %v1823_v15, -inf  ;;  %v1957_v59 = vsel %vm1956_vm11, %v1892_v12, %v1955_v50  ;;  %v1922_v42 = vsel %vm1826_vm7, %v1824_v63, -inf }
 0x18d   :  { %v1904_v33 = vrot.slane %v1903_v30, 1  ;;  %v1913_v9 = vrot.slane %v1912_v27, 4  ;;  %v1921_v38 = vmax.f32 %v1919_v4, %v1920_v41 }
 0x18e   :  { %v1924_v20 = vsel %vm1832_vm6, %v1825_v62, -inf }
 0x18f   :  { %v1905_v31 = vmax.f32 %v1903_v30, %v1904_v33  ;;  %v1923_v57 = vmax.f32 %v1921_v38, %v1922_v42  ;;  %v1914_v34 = vmax.f32 %v1912_v27, %v1913_v9 }
 0x191   :  { %v1959_v49 = vsel %vm1958_vm12, %v1905_v31, %v1957_v59  ;;  %v1925_v60 = vmax.f32 %v1923_v57, %v1924_v20  ;;  %v1915_v58 = vrot.slane %v1914_v34, 2 }
 0x193   :  { %v1926_v39 = vrot.slane %v1925_v60, 4  ;;  %v1916_v56 = vmax.f32 %v1914_v34, %v1915_v58 }
 0x195   :  { %v1917_v28 = vrot.slane %v1916_v56, 1  ;;  %v1927_v13 = vmax.f32 %v1925_v60, %v1926_v39 }
 0x197   :  { %v1918_v45 = vmax.f32 %v1916_v56, %v1917_v28  ;;  %v1928_v10 = vrot.slane %v1927_v13, 2 }
 0x199   :  { %v1929_v19 = vmax.f32 %v1927_v13, %v1928_v10  ;;  %v1961_v3 = vsel %vm1960_vm13, %v1918_v45, %v1959_v49 }
 0x19b   :  { %v1930_v17 = vrot.slane %v1929_v19, 1 }
 0x19d   :  { %v1931_v0 = vmax.f32 %v1929_v19, %v1930_v17 }
 0x19f   :  { %v1963_v26 = vsel %vm1962_vm14, %v1931_v0, %v1961_v3 }
 0x1a0   :  { %2464 = vmatmul.mubr.msk.f32.vlgmr.msra.gmra.mxu1 %vm1826_vm7, %v1963_v26 }
 0x260   :  { %v2032_v52 = vpop.f32.mrf.mxu1 }
 0x261   :  { %v2033_v11 = vadd.f32 %v2180_v51, %v2032_v52 }
 0x262   :  { %v2465_v37 = vpop.f32.mrf.mxu1 }
 0x263   :  { %v2182_v40 = vmul.f32 -1.442695, %v2033_v11 }
 0x265   :  { %2499 = vpow2.f32 %v2182_v40 }
 0x272   :  { %v2500_v14 = vpop.eup %2499 }
 0x273   :  { %v2039_v47 = vadd.f32 1.0, %v2500_v14 }
 0x275   :  { %2501 = vrcp.f32 %v2039_v47 }
 0x282   :  { %v2502_v61 = vpop.eup %2501 }
 0x283   :  { %2042 = vst [vmem:[#allocation2] sm:$0xff] %v2502_v61 }
 0x284   :  { %2514 = shalt.err (!%p2511_p4)
}
 0x285   :  { %2052 = dma.vmem_to_hbm [thread:$0]  %s2050_s15, 128, %s3446_s6, [#allocation3]  }
 0x286   :  { %2523 = dma.done.wait [#allocation3], 128  }
 0x287   :  { %2524 = vsyncadd [#allocation3], 4294967168 }
 0x288   :  { %2056 = vsyncpa [#allocation3], 1 }

</bundles_post_ra>
